<compile_context>
chip_gen: v7x
topology: tpu7x:2x2x1
jax: 0.10.0
libtpu: 0.0.40
codegen_flags: <defaults>
</compile_context>

<pallas_src>
import functools

import jax
import jax.numpy as jnp
from jax.experimental import pallas as pl
from jax.experimental.pallas import tpu as pltpu


def _round_up(n: int, m: int) -> int:
    return ((n + m - 1) // m) * m


def _padded_tile_bytes(shape, dtype) -> int:
    """VMEM footprint of one buffer with (sublane, lane) tile padding."""
    itemsize = jnp.dtype(dtype).itemsize
    packing = max(1, 4 // itemsize)           # f32 -> 1, bf16 -> 2 (packed along sublanes)
    if len(shape) == 1:
        lead, rows, cols = 1, 1, shape[0]
    else:
        rows, cols = shape[-2], shape[-1]
        lead = 1
        for d in shape[:-2]:
            lead *= d
    rows_p = _round_up(max(rows, 1), 8 * packing)
    cols_p = _round_up(max(cols, 1), 128)
    return lead * rows_p * cols_p * itemsize


def _vmem_estimate(tb, input_dims, hidden, out_dim, compute_dtype) -> int:
    """Lane/sublane-padding-aware per-step VMEM estimate (bytes)."""
    est = 0
    est += 2 * _padded_tile_bytes((tb, input_dims), compute_dtype)   # x tile, double-buffered
    est += 2 * _padded_tile_bytes((tb, out_dim), jnp.float32)        # out tile, double-buffered
    resident = [
        ((input_dims, hidden), compute_dtype), ((1, hidden), jnp.float32),
        ((hidden, hidden), compute_dtype),     ((1, hidden), jnp.float32),
        ((hidden, out_dim), compute_dtype),    ((1, out_dim), jnp.float32),
    ]
    for shp, dt in resident:                                          # single-buffered residents
        est += _padded_tile_bytes(shp, dt)
    est += 2 * _padded_tile_bytes((tb, hidden), jnp.float32)          # h1, h2 temporaries
    est += 2 * _padded_tile_bytes((tb, out_dim), jnp.float32)         # logits, corr temporaries
    return est


def _make_kernel(num_classes: int, num_output_dims: int, compute_dtype):
    def kernel(x_ref, w1_ref, b1_ref, w2_ref, b2_ref, w3_ref, b3_ref, out_ref):
        x = x_ref[...]                                   # (tb, input_dims), compute_dtype

        # Linear -> ReLU (f32 accumulation / bias / activation)
        h1 = jnp.dot(x, w1_ref[...], preferred_element_type=jnp.float32) + b1_ref[...]
        h1 = jnp.maximum(h1, 0.0)

        # Linear -> ReLU
        h2 = jnp.dot(h1.astype(compute_dtype), w2_ref[...],
                     preferred_element_type=jnp.float32) + b2_ref[...]
        h2 = jnp.maximum(h2, 0.0)

        # Final Linear -> logits (tb, num_output_dims * num_classes), f32
        logits = jnp.dot(h2.astype(compute_dtype), w3_ref[...],
                         preferred_element_type=jnp.float32) + b3_ref[...]

        # Grouped log_softmax over each contiguous block of `num_classes` along the last dim
        # (matches F.log_softmax(logits.view(bsz*num_output_dims, num_classes), dim=-1)).
        # Only the tiny per-group max/LSE reductions are unrolled; the correction term is
        # broadcast back to full width and subtracted with a SINGLE full-block store.
        C = num_classes
        corr_parts = []
        for o in range(num_output_dims):
            chunk = logits[:, o * C:(o + 1) * C]
            m = jnp.max(chunk, axis=-1, keepdims=True)
            lse = m + jnp.log(jnp.sum(jnp.exp(chunk - m), axis=-1, keepdims=True))
            corr_parts.append(jnp.broadcast_to(lse, chunk.shape))
        if num_output_dims == 1:
            corr = corr_parts[0]
        else:
            corr = jnp.concatenate(corr_parts, axis=-1)

        out_ref[...] = logits - corr

    return kernel


def discrete_classifier_forward(x, params, *, num_classes, num_output_dims,
                                block_batch=512, compute_dtype=jnp.bfloat16):
    """Pallas implementation of DiscreteClassifier.forward.

    x: (bsz, input_dims) float32
    params: dict with w1 (in,h), b1 (1,h), w2 (h,h), b2 (1,h),
            w3 (h, num_classes*num_output_dims), b3 (1, num_classes*num_output_dims)
    returns: (bsz*num_output_dims, num_classes) if num_output_dims > 1 else (bsz, num_classes),
             log-softmaxed over the last dim (float32).
    """
    bsz, input_dims = x.shape
    hidden = params["w1"].shape[1]
    out_dim = num_classes * num_output_dims

    # Batch tile: multiple of 128 (MXU rows / bf16 sublane packing), clamped so tiny batches
    # don't over-allocate. On v7x, pick block_batch so n_tiles is even (dual-TC sharding).
    tb = _round_up(max(1, int(block_batch)), 128)
    tb = min(tb, _round_up(bsz, 128))
    n_tiles = pl.cdiv(bsz, tb)   # ragged last block handled by Pallas (no pad/slice in wrapper)

    kernel = _make_kernel(num_classes, num_output_dims, compute_dtype)

    # Cast x and weights at the pallas_call boundary; biases stay f32 (f32 bias-add/ReLU path).
    xc = x.astype(compute_dtype)
    w1 = params["w1"].astype(compute_dtype)
    w2 = params["w2"].astype(compute_dtype)
    w3 = params["w3"].astype(compute_dtype)
    b1, b2, b3 = params["b1"], params["b2"], params["b3"]

    # Weights/biases: whole array resident in VMEM (copied in once, single-buffered).
    resident = pl.BlockSpec(memory_space=pltpu.MemorySpace.VMEM)

    # Lane-padding-aware VMEM budget; only raise the scoped limit when actually needed
    # (default scoped limits: 16 MiB v5e, 32 MiB v6e/v7x; v7x physical is 64 MiB).
    vmem_est = _vmem_estimate(tb, input_dims, hidden, out_dim, compute_dtype)
    vmem_limit = None
    if vmem_est > 12 * 1024 * 1024:
        vmem_limit = min(2 * vmem_est, 64 * 1024 * 1024)

    cd_bytes = jnp.dtype(compute_dtype).itemsize
    cost = pl.CostEstimate(
        flops=2 * bsz * (input_dims * hidden + hidden * hidden + hidden * out_dim),
        transcendentals=bsz * (out_dim + num_output_dims),
        bytes_accessed=(bsz * input_dims * cd_bytes
                        + (input_dims * hidden + hidden * hidden + hidden * out_dim) * cd_bytes
                        + (2 * hidden + out_dim) * 4
                        + bsz * out_dim * 4),
    )

    out = pl.pallas_call(
        kernel,
        out_shape=jax.ShapeDtypeStruct((bsz, out_dim), jnp.float32),
        grid_spec=pl.GridSpec(
            grid=(n_tiles,),
            in_specs=[
                pl.BlockSpec((tb, input_dims), lambda i: (i, 0)),  # x tile, pipelined
                resident,  # w1
                resident,  # b1
                resident,  # w2
                resident,  # b2
                resident,  # w3
                resident,  # b3
            ],
            out_specs=pl.BlockSpec((tb, out_dim), lambda i: (i, 0)),
        ),
        compiler_params=pltpu.CompilerParams(
            dimension_semantics=("parallel",),   # independent batch tiles (v7x dual-TC)
            vmem_limit_bytes=vmem_limit),
        cost_estimate=cost,
    )(xc, w1, b1, w2, b2, w3, b3)

    if num_output_dims > 1:
        out = out.reshape(bsz * num_output_dims, num_classes)
    return out


def init_params(key, input_dims, hidden, num_classes, num_output_dims):
    """Deterministic synthetic init (shapes match the nn.Linear layers, transposed)."""
    out_dim = num_classes * num_output_dims
    k1, k2, k3, k4, k5, k6 = jax.random.split(key, 6)
    scale1 = 1.0 / jnp.sqrt(input_dims)
    scale2 = 1.0 / jnp.sqrt(hidden)
    return {
        "w1": jax.random.uniform(k1, (input_dims, hidden), jnp.float32, -scale1, scale1),
        "b1": jax.random.uniform(k2, (1, hidden), jnp.float32, -scale1, scale1),
        "w2": jax.random.uniform(k3, (hidden, hidden), jnp.float32, -scale2, scale2),
        "b2": jax.random.uniform(k4, (1, hidden), jnp.float32, -scale2, scale2),
        "w3": jax.random.uniform(k5, (hidden, out_dim), jnp.float32, -scale2, scale2),
        "b3": jax.random.uniform(k6, (1, out_dim), jnp.float32, -scale2, scale2),
    }


def _reference(x, params, num_classes, num_output_dims, compute_dtype=jnp.float32):
    cd = compute_dtype
    h1 = jax.nn.relu(jnp.dot(x.astype(cd), params["w1"].astype(cd),
                             preferred_element_type=jnp.float32) + params["b1"])
    h2 = jax.nn.relu(jnp.dot(h1.astype(cd), params["w2"].astype(cd),
                             preferred_element_type=jnp.float32) + params["b2"])
    logits = jnp.dot(h2.astype(cd), params["w3"].astype(cd),
                     preferred_element_type=jnp.float32) + params["b3"]
    if num_output_dims > 1:
        logits = logits.reshape(x.shape[0] * num_output_dims, num_classes)
    return jax.nn.log_softmax(logits, axis=-1)


if __name__ == "__main__":
    num_classes = 8
    num_output_dims = 2
    input_dims = 16
    hidden = 32
    bsz = 300  # deliberately NOT a multiple of the tile -> exercises the ragged last block

    key = jax.random.PRNGKey(0)
    kx, kp = jax.random.split(key)
    x = jax.random.normal(kx, (bsz, input_dims), jnp.float32)
    params = init_params(kp, input_dims, hidden, num_classes, num_output_dims)

    # Exact f32 path: tight correctness check.
    fwd_f32 = jax.jit(functools.partial(
        discrete_classifier_forward,
        num_classes=num_classes, num_output_dims=num_output_dims,
        block_batch=256, compute_dtype=jnp.float32))
    out_f32 = fwd_f32(x, params)
    jax.block_until_ready(out_f32)
    ref_f32 = _reference(x, params, num_classes, num_output_dims, jnp.float32)
    assert out_f32.shape == (bsz * num_output_dims, num_classes), out_f32.shape
    assert jnp.allclose(out_f32, ref_f32, atol=1e-5, rtol=1e-5), "f32 mismatch vs reference"

    # Recommended perf path (bf16 weights/activations, f32 accumulation).
    fwd_bf16 = jax.jit(functools.partial(
        discrete_classifier_forward,
        num_classes=num_classes, num_output_dims=num_output_dims,
        block_batch=256, compute_dtype=jnp.bfloat16))
    out_bf16 = fwd_bf16(x, params)
    jax.block_until_ready(out_bf16)
    ref_bf16 = _reference(x, params, num_classes, num_output_dims, jnp.bfloat16)
    assert out_bf16.shape == (bsz * num_output_dims, num_classes), out_bf16.shape
    assert jnp.allclose(out_bf16, ref_bf16, atol=5e-3, rtol=5e-3), "bf16 mismatch vs reference"
    assert jnp.allclose(out_bf16, ref_f32, atol=3e-2, rtol=3e-2), "bf16 drifted too far from f32"

    print("KERNEL_OK")
</pallas_src>

<mosaic_0001>
module attributes {stable_mosaic.version = 11 : i64} {
  func.func @kernel(%arg0: i32, %arg1: memref<256x16xf32, #tpu.memory_space<vmem>>, %arg2: memref<16x32xf32, #tpu.memory_space<vmem>>, %arg3: memref<1x32xf32, #tpu.memory_space<vmem>>, %arg4: memref<32x32xf32, #tpu.memory_space<vmem>>, %arg5: memref<1x32xf32, #tpu.memory_space<vmem>>, %arg6: memref<32x16xf32, #tpu.memory_space<vmem>>, %arg7: memref<1x16xf32, #tpu.memory_space<vmem>>, %arg8: memref<256x16xf32, #tpu.memory_space<vmem>>) attributes {dimension_semantics = [#tpu.dimension_semantics<parallel>], iteration_bounds = array<i64: 2>, scalar_prefetch = 0 : i64, scratch_operands = 0 : i64, tpu.core_type = #tpu.core_type<tc>, window_params = [{transform_indices = @transform_0, window_bounds = array<i64: 256, 16>}, {pipeline_mode = #tpu.pipeline_mode<synchronous>, transform_indices = @transform_1, window_bounds = array<i64: 16, 32>}, {pipeline_mode = #tpu.pipeline_mode<synchronous>, transform_indices = @transform_2, window_bounds = array<i64: 1, 32>}, {pipeline_mode = #tpu.pipeline_mode<synchronous>, transform_indices = @transform_3, window_bounds = array<i64: 32, 32>}, {pipeline_mode = #tpu.pipeline_mode<synchronous>, transform_indices = @transform_4, window_bounds = array<i64: 1, 32>}, {pipeline_mode = #tpu.pipeline_mode<synchronous>, transform_indices = @transform_5, window_bounds = array<i64: 32, 16>}, {pipeline_mode = #tpu.pipeline_mode<synchronous>, transform_indices = @transform_6, window_bounds = array<i64: 1, 16>}, {transform_indices = @transform_7, window_bounds = array<i64: 256, 16>}]} {
    %c0 = arith.constant 0 : index
    %c0_0 = arith.constant 0 : index
    %0 = vector.load %arg1[%c0, %c0_0] : memref<256x16xf32, #tpu.memory_space<vmem>>, vector<256x16xf32>
    %c0_1 = arith.constant 0 : index
    %c0_2 = arith.constant 0 : index
    %1 = vector.load %arg2[%c0_1, %c0_2] : memref<16x32xf32, #tpu.memory_space<vmem>>, vector<16x32xf32>
    %cst = arith.constant dense<0.000000e+00> : vector<256x32xf32>
    %2 = tpu.matmul %0, %1, %cst {dimension_numbers = #tpu.dot_dimension_numbers<[1], [0], [0], [1], [0, 0, 1, 1], [], []>} : vector<256x16xf32>, vector<16x32xf32>, vector<256x32xf32> -> vector<256x32xf32>
    %c0_3 = arith.constant 0 : index
    %c0_4 = arith.constant 0 : index
    %3 = vector.load %arg3[%c0_3, %c0_4] : memref<1x32xf32, #tpu.memory_space<vmem>>, vector<1x32xf32>
    %4 = vector.broadcast %3 : vector<1x32xf32> to vector<256x32xf32>
    %5 = arith.addf %2, %4 : vector<256x32xf32>
    %cst_5 = arith.constant 0.000000e+00 : f32
    %6 = vector.broadcast %cst_5 : f32 to vector<256x32xf32>
    %7 = arith.maximumf %5, %6 : vector<256x32xf32>
    %c0_6 = arith.constant 0 : index
    %c0_7 = arith.constant 0 : index
    %8 = vector.load %arg4[%c0_6, %c0_7] : memref<32x32xf32, #tpu.memory_space<vmem>>, vector<32x32xf32>
    %cst_8 = arith.constant dense<0.000000e+00> : vector<256x32xf32>
    %9 = tpu.matmul %7, %8, %cst_8 {dimension_numbers = #tpu.dot_dimension_numbers<[1], [0], [0], [1], [0, 0, 1, 1], [], []>} : vector<256x32xf32>, vector<32x32xf32>, vector<256x32xf32> -> vector<256x32xf32>
    %c0_9 = arith.constant 0 : index
    %c0_10 = arith.constant 0 : index
    %10 = vector.load %arg5[%c0_9, %c0_10] : memref<1x32xf32, #tpu.memory_space<vmem>>, vector<1x32xf32>
    %11 = vector.broadcast %10 : vector<1x32xf32> to vector<256x32xf32>
    %12 = arith.addf %9, %11 : vector<256x32xf32>
    %cst_11 = arith.constant 0.000000e+00 : f32
    %13 = vector.broadcast %cst_11 : f32 to vector<256x32xf32>
    %14 = arith.maximumf %12, %13 : vector<256x32xf32>
    %c0_12 = arith.constant 0 : index
    %c0_13 = arith.constant 0 : index
    %15 = vector.load %arg6[%c0_12, %c0_13] : memref<32x16xf32, #tpu.memory_space<vmem>>, vector<32x16xf32>
    %cst_14 = arith.constant dense<0.000000e+00> : vector<256x16xf32>
    %16 = tpu.matmul %14, %15, %cst_14 {dimension_numbers = #tpu.dot_dimension_numbers<[1], [0], [0], [1], [0, 0, 1, 1], [], []>} : vector<256x32xf32>, vector<32x16xf32>, vector<256x16xf32> -> vector<256x16xf32>
    %c0_15 = arith.constant 0 : index
    %c0_16 = arith.constant 0 : index
    %17 = vector.load %arg7[%c0_15, %c0_16] : memref<1x16xf32, #tpu.memory_space<vmem>>, vector<1x16xf32>
    %18 = vector.broadcast %17 : vector<1x16xf32> to vector<256x16xf32>
    %19 = arith.addf %16, %18 : vector<256x16xf32>
    %20 = vector.extract_strided_slice %19 {offsets = [0, 0], sizes = [256, 8], strides = [1, 1]} : vector<256x16xf32> to vector<256x8xf32>
    %cst_17 = arith.constant dense<0xFF800000> : vector<256xf32>
    %21 = vector.multi_reduction <maximumf>, %20, %cst_17 [1] : vector<256x8xf32> to vector<256xf32>
    %22 = vector.shape_cast %21 : vector<256xf32> to vector<256x1xf32>
    %23 = vector.broadcast %22 : vector<256x1xf32> to vector<256x8xf32>
    %24 = arith.subf %20, %23 : vector<256x8xf32>
    %25 = math.exp %24 : vector<256x8xf32>
    %cst_18 = arith.constant dense<0.000000e+00> : vector<256xf32>
    %26 = vector.multi_reduction <add>, %25, %cst_18 [1] : vector<256x8xf32> to vector<256xf32>
    %27 = vector.shape_cast %26 : vector<256xf32> to vector<256x1xf32>
    %28 = math.log %27 : vector<256x1xf32>
    %29 = arith.addf %22, %28 : vector<256x1xf32>
    %30 = vector.shape_cast %29 : vector<256x1xf32> to vector<256x1xf32>
    %31 = vector.broadcast %30 : vector<256x1xf32> to vector<256x8xf32>
    %32 = vector.extract_strided_slice %19 {offsets = [0, 8], sizes = [256, 8], strides = [1, 1]} : vector<256x16xf32> to vector<256x8xf32>
    %cst_19 = arith.constant dense<0xFF800000> : vector<256xf32>
    %33 = vector.multi_reduction <maximumf>, %32, %cst_19 [1] : vector<256x8xf32> to vector<256xf32>
    %34 = vector.shape_cast %33 : vector<256xf32> to vector<256x1xf32>
    %35 = vector.broadcast %34 : vector<256x1xf32> to vector<256x8xf32>
    %36 = arith.subf %32, %35 : vector<256x8xf32>
    %37 = math.exp %36 : vector<256x8xf32>
    %cst_20 = arith.constant dense<0.000000e+00> : vector<256xf32>
    %38 = vector.multi_reduction <add>, %37, %cst_20 [1] : vector<256x8xf32> to vector<256xf32>
    %39 = vector.shape_cast %38 : vector<256xf32> to vector<256x1xf32>
    %40 = math.log %39 : vector<256x1xf32>
    %41 = arith.addf %34, %40 : vector<256x1xf32>
    %42 = vector.shape_cast %41 : vector<256x1xf32> to vector<256x1xf32>
    %43 = vector.broadcast %42 : vector<256x1xf32> to vector<256x8xf32>
    %44 = tpu.concatenate %31, %43 in 1 : vector<256x8xf32>, vector<256x8xf32> -> vector<256x16xf32>
    %45 = arith.subf %19, %44 : vector<256x16xf32>
    %c0_21 = arith.constant 0 : index
    %c0_22 = arith.constant 0 : index
    %46 = vector.load %arg8[%c0_21, %c0_22] : memref<256x16xf32, #tpu.memory_space<vmem>>, vector<256x16xf32>
    tpu.vector_store %arg8[%c0_21, %c0_22], %45 {strides = array<i32>} : memref<256x16xf32, #tpu.memory_space<vmem>>, vector<256x16xf32>,
    return
  }
  func.func @transform_0(%arg0: i32) -> (i32, i32) {
    %c0_i32 = arith.constant 0 : i32
    %c0_i32_0 = arith.constant 0 : i32
    return %arg0, %c0_i32 : i32, i32
  }
  func.func @transform_1(%arg0: i32) -> (i32, i32) {
    %c0_i32 = arith.constant 0 : i32
    %c0_i32_0 = arith.constant 0 : i32
    %c0_i32_1 = arith.constant 0 : i32
    return %c0_i32, %c0_i32_0 : i32, i32
  }
  func.func @transform_2(%arg0: i32) -> (i32, i32) {
    %c0_i32 = arith.constant 0 : i32
    %c0_i32_0 = arith.constant 0 : i32
    %c0_i32_1 = arith.constant 0 : i32
    return %c0_i32, %c0_i32_0 : i32, i32
  }
  func.func @transform_3(%arg0: i32) -> (i32, i32) {
    %c0_i32 = arith.constant 0 : i32
    %c0_i32_0 = arith.constant 0 : i32
    %c0_i32_1 = arith.constant 0 : i32
    return %c0_i32, %c0_i32_0 : i32, i32
  }
  func.func @transform_4(%arg0: i32) -> (i32, i32) {
    %c0_i32 = arith.constant 0 : i32
    %c0_i32_0 = arith.constant 0 : i32
    %c0_i32_1 = arith.constant 0 : i32
    return %c0_i32, %c0_i32_0 : i32, i32
  }
  func.func @transform_5(%arg0: i32) -> (i32, i32) {
    %c0_i32 = arith.constant 0 : i32
    %c0_i32_0 = arith.constant 0 : i32
    %c0_i32_1 = arith.constant 0 : i32
    return %c0_i32, %c0_i32_0 : i32, i32
  }
  func.func @transform_6(%arg0: i32) -> (i32, i32) {
    %c0_i32 = arith.constant 0 : i32
    %c0_i32_0 = arith.constant 0 : i32
    %c0_i32_1 = arith.constant 0 : i32
    return %c0_i32, %c0_i32_0 : i32, i32
  }
  func.func @transform_7(%arg0: i32) -> (i32, i32) {
    %c0_i32 = arith.constant 0 : i32
    %c0_i32_0 = arith.constant 0 : i32
    return %arg0, %c0_i32 : i32, i32
  }
}

</mosaic_0001>

<bundles_post_ra>
// kernel: discrete_classifier_forward.1
= control target key start
LH: loop header
LB: loop body
LE: loop exit
PB: predicated region body
PF: predicated region fallthrough
CT: control target
= control target key end

     0   :  { %s3617_s24 = smov 0   ;;  %s3619_s25 = smov 0   ;;  %s4926_s0 = inlined_call_operand.vmem [shape: f32[300,16], index: 0, kind: input, shape index: {}]   ;;  %s4927_s1 = inlined_call_operand.vmem [shape: f32[16,32], index: 1, kind: input, shape index: {}]   ;;  %s4928_s2 = inlined_call_operand.vmem [shape: f32[1,32], index: 2, kind: input, shape index: {}]   ;;  %s4929_s3 = inlined_call_operand.vmem [shape: f32[32,32], index: 3, kind: input, shape index: {}]   ;;  %s4930_s4 = inlined_call_operand.vmem [shape: f32[1,32], index: 4, kind: input, shape index: {}]   ;;  %s4931_s5 = inlined_call_operand.vmem [shape: f32[32,16], index: 5, kind: input, shape index: {}]   ;;  %s4932_s6 = inlined_call_operand.vmem [shape: f32[1,16], index: 6, kind: input, shape index: {}]   ;;  %s4933_s7 = inlined_call_operand.vmem [shape: f32[300,16], index: 7, kind: output, shape index: {}]  }
   0x1   :  { %s3621_s26 = smov 0  }
   0x2 LB: > { %s3630_s27 = sadd.s32 4294967295, %s3542_s26   ;;  %s3632_s28 = sadd.s32 1, %s3542_s26   ;;  %s3542_s26 = sphi %s3621_s26, %s5162_s26   ;;  %s3538_s25 = sphi %s3619_s25, %s5161_s25   ;;  %s3534_s24 = sphi %s3617_s24, %s5160_s24  }
   0x3   : > { %s173_s29 = ssub.s32 %s3542_s26, %s3632_s28  ;;  %s176_s30 = sadd.s32 1, %s3538_s25 }
   0x4   : > { %p174_p0 = scmp.eq.s32.totalorder %s173_s29, 0  ;;  %p186_p1 = scmp.ne.s32.totalorder %s3538_s25, %s3534_s24 }
   0x5   : > { %p187_p2 = scmp.eq.s32.totalorder %s3630_s27, 1  ;;  %p2728_p3 = scmp.ge.s32.totalorder %s3542_s26, 1 }
   0x6   : > { %s3640_s8 = scalar_select %p174_p0, %s3538_s25, %s176_s30  }
   0x7   : > { %p3642_p4 = por %p187_p2, %p186_p1  ;;  %p246_p5 = scmp.lt.s32.totalorder %s3542_s26, 3 }
   0x9   : > { %p247_p6 = pnand %p2728_p3, %p246_p5 }
   0xb   : > { %250 = sbr.rel (%p247_p6) target bundleno = 1981 (0x7bd), region = 48 }
  0x12   : > { %v332_v0 = vld [vmem:[%s4927_s1] sm:$0xff]  ;;  %v333_v1 = vld [vmem:[%s4927_s1 + $0x8] sm:$0xff]  ;;  %s3653_s14 = sshll.u32 %s3630_s27, 5  ;;  %vm341_vm0 = vcmask 130048   ;;  %v697_v9 = vld [vmem:[%s4929_s3 + $0x10] sm:$0xff]  ;;  %vm706_vm1 = vcmask 261120  }
  0x13   : > { %v695_v2 = vld [vmem:[%s4929_s3] sm:$0xff]  ;;  %v3121_v3 = vpack.c.bf16 %v333_v1, %v332_v0  ;;  %p286_p7 = scmp.lt.s32.totalorder %s3653_s14, 37  ;;  %v696_v4 = vld [vmem:[%s4929_s3 + $0x8] sm:$0xff]  ;;  %v698_v10 = vld [vmem:[%s4929_s3 + $0x18] sm:$0xff]  ;;  %vm1777_vm2 = vcmask 130112   ;;  %vm1392_vm3 = vcmask 64512  }
  0x14   : > { %v3125_v5 = vpack.c.bf16 %v696_v4, %v695_v2  ;;  %v3129_v15 = vpack.c.bf16 %v698_v10, %v697_v9  ;;  %v1060_v41 = vld [vmem:[%s4931_s5] sm:$0xff]  ;;  %v1061_v42 = vld [vmem:[%s4931_s5 + $0x8] sm:$0xff]  ;;  %v1062_v43 = vld [vmem:[%s4931_s5 + $0x10] sm:$0xff]  ;;  %s3576_s30 = smov 120   ;;  %s278_s10 = sand.u32 1, %s3534_s24  }
  0x15   : > { %3122 = vmatprep.subr.bf16.mxu0 %v3121_v3  ;;  %s287_s19 = scalar_select %p286_p7, %s3653_s14, 37  ;;  %3141 = vmatprep.subr.bf16.mxu1 %v3121_v3  ;;  %v3133_v44 = vpack.c.bf16 %v1061_v42, %v1060_v41  ;;  %v1063_v45 = vld [vmem:[%s4931_s5 + $0x18] sm:$0xff]  ;;  %v3753_v47 = vld [vmem:[%s4928_s2] ss:$0 sm:$0xff] }
  0x16   : > { %3124 = vmatpush3.bf16.msra.mxu0 %v3121_v3  ;;  %3142 = vmatpush3.bf16.msra.mxu1 %v3121_v3  ;;  %v3137_v46 = vpack.c.bf16 %v1063_v45, %v1062_v43  ;;  %s2729_s11 = sshll.u32 %s278_s10, 8  ;;  %s2394_s12 = ssub.s32 (%p3642_p4), 38, %s3653_s14 }
  0x17   : > { %s2731_s20 = sshll.u32 %s287_s19, 3  ;;  %3126 = vmatprep.subr.bf16.mxu1 %v3125_v5  ;;  %3134 = vmatprep.subr.bf16.mxu0 %v3133_v44  ;;  %s4571_s24 = scalar_lea.vmem [#allocation2], %s2729_s11  }
  0x18   : > { %s3666_s23 = scalar_lea.vmem %s4926_s0, %s2731_s20  ;;  %s2848_s13 = sshll.u32 (%p3642_p4), %s3630_s27, 8 }
  0x19   : > { %v300_v6 = vld [vmem:[%s3666_s23] sm:$0xff]  ;;  %v301_v7 = vld [vmem:[%s3666_s23 + $0x8] sm:$0xff]  ;;  %v302_v8 = vld [vmem:[%s3666_s23 + $0x10] sm:$0xff]  ;;  %p2395_p8 = scmp.lt.s32.totalorder (%p3642_p4), %s2394_s12, 32  ;;  %s4794_s17 = scalar_lea.vmem (%p3642_p4), %s4933_s7, %s2848_s13  }
  0x1a   : > { %2961 = vmatprep.mubr.msk.f32.mxu0 %vm341_vm0, %v300_v6  ;;  %v303_v11 = vld [vmem:[%s3666_s23 + $0x18] sm:$0xff]  ;;  %v304_v12 = vld [vmem:[%s3666_s23 + $0x20] sm:$0xff]  ;;  %v317_v14 = vld [vmem:[%s3666_s23 + $0x88] sm:$0xff] }
  0x1b   : > { %2962 = vmatmul.mubr.msk.f32.vlgmr.msra.gmra.mrb[0].mxu0 %vm341_vm0, %v301_v7  ;;  %v316_v13 = vld [vmem:[%s3666_s23 + $0x80] sm:$0xff]  ;;  %v318_v16 = vld [vmem:[%s3666_s23 + $0x90] sm:$0xff]  ;;  %v305_v17 = vld [vmem:[%s3666_s23 + $0x28] sm:$0xff] }
  0x1c   : > { %2964 = vmatprep.mubr.msk.f32.mxu0 %vm341_vm0, %v302_v8  ;;  %2985 = vmatprep.mubr.msk.f32.mxu1 %vm341_vm0, %v316_v13  ;;  %v306_v18 = vld [vmem:[%s3666_s23 + $0x30] sm:$0xff]  ;;  %v319_v19 = vld [vmem:[%s3666_s23 + $0x98] sm:$0xff]  ;;  %v320_v20 = vld [vmem:[%s3666_s23 + $0xa0] sm:$0xff] }
  0x1d   : > { %2986 = vmatmul.mubr.msk.f32.vlgmr.msra.gmra.mrb[0].mxu1 %vm341_vm0, %v317_v14  ;;  %v307_v21 = vld [vmem:[%s3666_s23 + $0x38] sm:$0xff]  ;;  %v308_v22 = vld [vmem:[%s3666_s23 + $0x40] sm:$0xff]  ;;  %v321_v23 = vld [vmem:[%s3666_s23 + $0xa8] sm:$0xff]  ;;  %3136 = vmatpush3.bf16.msra.mxu0 %v3133_v44 }
  0x1e   : > { %2988 = vmatprep.mubr.msk.f32.mxu1 %vm341_vm0, %v318_v16  ;;  %3128 = vmatpush3.bf16.msra.mxu1 %v3125_v5  ;;  %v322_v24 = vld [vmem:[%s3666_s23 + $0xb0] sm:$0xff]  ;;  %v309_v25 = vld [vmem:[%s3666_s23 + $0x48] sm:$0xff]  ;;  %v323_v27 = vld [vmem:[%s3666_s23 + $0xb8] sm:$0xff] }
  0x1f   : > { %2965 = vmatmul.mubr.msk.f32.gmra.mrb[2].mxu0 %vm341_vm0, %v303_v11  ;;  %3130 = vmatprep.subr.bf16.mxu1 %v3129_v15  ;;  %v310_v26 = vld [vmem:[%s3666_s23 + $0x50] sm:$0xff]  ;;  %v324_v28 = vld [vmem:[%s3666_s23 + $0xc0] sm:$0xff]  ;;  %v311_v29 = vld [vmem:[%s3666_s23 + $0x58] sm:$0xff] }
  0x20   : > { %2967 = vmatprep.mubr.msk.f32.mxu0 %vm341_vm0, %v304_v12  ;;  %v312_v30 = vld [vmem:[%s3666_s23 + $0x60] sm:$0xff]  ;;  %v325_v31 = vld [vmem:[%s3666_s23 + $0xc8] sm:$0xff]  ;;  %v326_v32 = vld [vmem:[%s3666_s23 + $0xd0] sm:$0xff]  ;;  %3138 = vmatprep.subr.bf16.mxu0 %v3137_v46 }
  0x21   : > { %2989 = vmatmul.mubr.msk.f32.gmra.mrb[2].mxu1 %vm341_vm0, %v319_v19  ;;  %v313_v33 = vld [vmem:[%s3666_s23 + $0x68] sm:$0xff]  ;;  %v314_v34 = vld [vmem:[%s3666_s23 + $0x70] sm:$0xff]  ;;  %v327_v35 = vld [vmem:[%s3666_s23 + $0xd8] sm:$0xff]  ;;  %3140 = vmatpush3.bf16.msra.mxu0 %v3137_v46 }
  0x22   : > { %2991 = vmatprep.mubr.msk.f32.mxu1 %vm341_vm0, %v320_v20  ;;  %3132 = vmatpush3.bf16.msra.mxu1 %v3129_v15  ;;  %v328_v36 = vld [vmem:[%s3666_s23 + $0xe0] sm:$0xff]  ;;  %v315_v37 = vld [vmem:[%s3666_s23 + $0x78] sm:$0xff]  ;;  %v329_v38 = vld [vmem:[%s3666_s23 + $0xe8] sm:$0xff] }
  0x23   : > { %2968 = vmatmul.mubr.msk.f32.gmra.mrb[4].mxu0 %vm341_vm0, %v305_v17  ;;  %v330_v39 = vld [vmem:[%s3666_s23 + $0xf0] sm:$0xff]  ;;  %v331_v40 = vld [vmem:[%s3666_s23 + $0xf8] sm:$0xff] }
  0x24   : > { %2970 = vmatprep.mubr.msk.f32.mxu0 %vm341_vm0, %v306_v18 }
  0x25   : > { %2992 = vmatmul.mubr.msk.f32.gmra.mrb[4].mxu1 %vm341_vm0, %v321_v23 }
  0x26   : > { %2994 = vmatprep.mubr.msk.f32.mxu1 %vm341_vm0, %v322_v24 }
  0x27   : > { %2971 = vmatmul.mubr.msk.f32.gmra.mrb[6].mxu0 %vm341_vm0, %v307_v21 }
  0x28   : > { %2973 = vmatprep.mubr.msk.f32.mxu0 %vm341_vm0, %v308_v22 }
  0x29   : > { %2995 = vmatmul.mubr.msk.f32.gmra.mrb[6].mxu1 %vm341_vm0, %v323_v27 }
  0x2a   : > { %2997 = vmatprep.mubr.msk.f32.mxu1 %vm341_vm0, %v324_v28 }
  0x2b   : > { %2974 = vmatmul.mubr.msk.f32.gmra.mrb[8].mxu0 %vm341_vm0, %v309_v25 }
  0x2c   : > { %2976 = vmatprep.mubr.msk.f32.mxu0 %vm341_vm0, %v310_v26 }
  0x2d   : > { %2998 = vmatmul.mubr.msk.f32.gmra.mrb[8].mxu1 %vm341_vm0, %v325_v31 }
  0x2e   : > { %3000 = vmatprep.mubr.msk.f32.mxu1 %vm341_vm0, %v326_v32 }
  0x2f   : > { %2977 = vmatmul.mubr.msk.f32.gmra.mrb[10].mxu0 %vm341_vm0, %v311_v29 }
  0x30   : > { %2979 = vmatprep.mubr.msk.f32.mxu0 %vm341_vm0, %v312_v30 }
  0x31   : > { %3001 = vmatmul.mubr.msk.f32.gmra.mrb[10].mxu1 %vm341_vm0, %v327_v35 }
  0x32   : > { %3003 = vmatprep.mubr.msk.f32.mxu1 %vm341_vm0, %v328_v36 }
  0x33   : > { %2980 = vmatmul.mubr.msk.f32.gmra.mrb[12].mxu0 %vm341_vm0, %v313_v33 }
  0x34   : > { %2982 = vmatprep.mubr.msk.f32.mxu0 %vm341_vm0, %v314_v34 }
  0x35   : > { %3004 = vmatmul.mubr.msk.f32.gmra.mrb[12].mxu1 %vm341_vm0, %v329_v38 }
  0x36   : > { %3006 = vmatprep.mubr.msk.f32.mxu1 %vm341_vm0, %v330_v39 }
  0x37   : > { %2983 = vmatmul.mubr.msk.f32.gmra.mrb[14].mxu0 %vm341_vm0, %v315_v37 }
  0x39   : > { %3007 = vmatmul.mubr.msk.f32.gmra.mrb[14].mxu1 %vm341_vm0, %v331_v40 }
  0xee   : > { %v2963_v48 = vpop.f32.mrb[0].mxu0 }
  0xef   : > { %v510_v49 = vadd.f32 %v2963_v48, %v3753_v47  ;;  %v504_v50 = vpop.f32.mrb[1].mxu0 }
  0xf0   : > { %v505_v51 = vadd.f32 %v3753_v47, %v504_v50  ;;  %v3758_v57 = vpop.f32.mrb[0].mxu1 }
  0xf1   : > { %v664_v54 = vmax.f32 %v510_v49, 0.0  ;;  %v584_v59 = vpop.f32.mrb[1].mxu1  ;;  %v590_v46 = vadd.f32 %v3758_v57, %v3753_v47 }
  0xf2   : > { %v663_v52 = vmax.f32 %v505_v51, 0.0  ;;  %v2966_v53 = vpop.f32.mrb[2].mxu0  ;;  %v585_v39 = vadd.f32 %v3753_v47, %v584_v59 }
  0xf3   : > { %v520_v55 = vadd.f32 %v2966_v53, %v3753_v47  ;;  %v514_v56 = vpop.f32.mrb[3].mxu0  ;;  %v680_v53 = vmax.f32 %v590_v46, 0.0 }
  0xf4   : > { %v515_v58 = vadd.f32 %v3753_v47, %v514_v56  ;;  %3017 = vmatprep.mubr.msk.f32.mxu1 %vm706_vm1, %v663_v52  ;;  %v3764_v1 = vpop.f32.mrb[2].mxu1  ;;  %v679_v49 = vmax.f32 %v585_v39, 0.0 }
  0xf5   : > { %v666_v60 = vmax.f32 %v520_v55, 0.0  ;;  %3018 = vmatmul.mubr.msk.f32.vlgmr.msra.gmra.mrb[16].mxu1 %vm706_vm1, %v664_v54  ;;  %v594_v3 = vpop.f32.mrb[3].mxu1  ;;  %v600_v54 = vadd.f32 %v3764_v1, %v3753_v47 }
  0xf6   : > { %v665_v61 = vmax.f32 %v515_v58, 0.0  ;;  %v2969_v62 = vpop.f32.mrb[4].mxu0  ;;  %v595_v50 = vadd.f32 %v3753_v47, %v594_v3 }
  0xf7   : > { %v530_v63 = vadd.f32 %v2969_v62, %v3753_v47  ;;  %v524_v0 = vpop.f32.mrb[5].mxu0  ;;  %v682_v57 = vmax.f32 %v600_v54, 0.0 }
  0xf8   : > { %3020 = vmatprep.mubr.msk.f32.mxu1 %vm706_vm1, %v665_v61  ;;  %v525_v2 = vadd.f32 %v3753_v47, %v524_v0  ;;  %v2993_v9 = vpop.f32.mrb[4].mxu1  ;;  %v681_v55 = vmax.f32 %v595_v50, 0.0 }
  0xf9   : > { %3021 = vmatmul.mubr.msk.f32.gmra.mrb[18].mxu1 %vm706_vm1, %v666_v60  ;;  %v668_v4 = vmax.f32 %v530_v63, 0.0  ;;  %v604_v11 = vpop.f32.mrb[5].mxu1  ;;  %v610_v58 = vadd.f32 %v2993_v9, %v3753_v47 }
  0xfa   : > { %v667_v5 = vmax.f32 %v525_v2, 0.0  ;;  %v2972_v6 = vpop.f32.mrb[6].mxu0  ;;  %v605_v56 = vadd.f32 %v3753_v47, %v604_v11 }
  0xfb   : > { %v540_v7 = vadd.f32 %v2972_v6, %v3753_v47  ;;  %v534_v8 = vpop.f32.mrb[7].mxu0  ;;  %v684_v61 = vmax.f32 %v610_v58, 0.0 }
  0xfc   : > { %3023 = vmatprep.mubr.msk.f32.mxu1 %vm706_vm1, %v667_v5  ;;  %v535_v10 = vadd.f32 %v3753_v47, %v534_v8  ;;  %v2996_v17 = vpop.f32.mrb[6].mxu1  ;;  %v683_v59 = vmax.f32 %v605_v56, 0.0 }
  0xfd   : > { %3024 = vmatmul.mubr.msk.f32.gmra.mrb[20].mxu1 %vm706_vm1, %v668_v4  ;;  %v670_v12 = vmax.f32 %v540_v7, 0.0  ;;  %v614_v19 = vpop.f32.mrb[7].mxu1  ;;  %v620_v62 = vadd.f32 %v2996_v17, %v3753_v47  ;;  %v3828_v17 = vld [vmem:[%s4930_s4] ss:$0 sm:$0xff] }
  0xfe   : > { %v669_v13 = vmax.f32 %v535_v10, 0.0  ;;  %v2975_v14 = vpop.f32.mrb[8].mxu0  ;;  %v615_v60 = vadd.f32 %v3753_v47, %v614_v19 }
  0xff   : > { %v550_v15 = vadd.f32 %v2975_v14, %v3753_v47  ;;  %v544_v16 = vpop.f32.mrb[9].mxu0  ;;  %v686_v1 = vmax.f32 %v620_v62, 0.0 }
 0x100   : > { %3026 = vmatprep.mubr.msk.f32.mxu1 %vm706_vm1, %v669_v13  ;;  %v545_v18 = vadd.f32 %v3753_v47, %v544_v16  ;;  %v2999_v25 = vpop.f32.mrb[8].mxu1  ;;  %v685_v63 = vmax.f32 %v615_v60, 0.0 }
 0x101   : > { %3027 = vmatmul.mubr.msk.f32.gmra.mrb[22].mxu1 %vm706_vm1, %v670_v12  ;;  %v672_v20 = vmax.f32 %v550_v15, 0.0  ;;  %v624_v27 = vpop.f32.mrb[9].mxu1  ;;  %v630_v2 = vadd.f32 %v2999_v25, %v3753_v47 }
 0x102   : > { %v671_v21 = vmax.f32 %v545_v18, 0.0  ;;  %v2978_v22 = vpop.f32.mrb[10].mxu0  ;;  %v625_v0 = vadd.f32 %v3753_v47, %v624_v27 }
 0x103   : > { %v560_v23 = vadd.f32 %v2978_v22, %v3753_v47  ;;  %v554_v24 = vpop.f32.mrb[11].mxu0  ;;  %v688_v5 = vmax.f32 %v630_v2, 0.0 }
 0x104   : > { %3029 = vmatprep.mubr.msk.f32.mxu1 %vm706_vm1, %v671_v21  ;;  %v555_v26 = vadd.f32 %v3753_v47, %v554_v24  ;;  %v3002_v33 = vpop.f32.mrb[10].mxu1  ;;  %v687_v3 = vmax.f32 %v625_v0, 0.0 }
 0x105   : > { %3030 = vmatmul.mubr.msk.f32.gmra.mrb[24].mxu1 %vm706_vm1, %v672_v20  ;;  %v674_v28 = vmax.f32 %v560_v23, 0.0  ;;  %v634_v35 = vpop.f32.mrb[11].mxu1  ;;  %v640_v6 = vadd.f32 %v3002_v33, %v3753_v47 }
 0x106   : > { %v673_v29 = vmax.f32 %v555_v26, 0.0  ;;  %v2981_v30 = vpop.f32.mrb[12].mxu0  ;;  %v635_v4 = vadd.f32 %v3753_v47, %v634_v35 }
 0x107   : > { %v570_v31 = vadd.f32 %v2981_v30, %v3753_v47  ;;  %v564_v32 = vpop.f32.mrb[13].mxu0  ;;  %v690_v9 = vmax.f32 %v640_v6, 0.0 }
 0x108   : > { %3032 = vmatprep.mubr.msk.f32.mxu1 %vm706_vm1, %v673_v29  ;;  %v565_v34 = vadd.f32 %v3753_v47, %v564_v32  ;;  %v3005_v42 = vpop.f32.mrb[12].mxu1  ;;  %v689_v7 = vmax.f32 %v635_v4, 0.0 }
 0x109   : > { %3033 = vmatmul.mubr.msk.f32.gmra.mrb[26].mxu1 %vm706_vm1, %v674_v28  ;;  %v676_v36 = vmax.f32 %v570_v31, 0.0  ;;  %v644_v44 = vpop.f32.mrb[13].mxu1  ;;  %v650_v10 = vadd.f32 %v3005_v42, %v3753_v47 }
 0x10a   : > { %v675_v37 = vmax.f32 %v565_v34, 0.0  ;;  %v2984_v38 = vpop.f32.mrb[14].mxu0  ;;  %v645_v8 = vadd.f32 %v3753_v47, %v644_v44 }
 0x10b   : > { %v580_v40 = vadd.f32 %v2984_v38, %v3753_v47  ;;  %v574_v41 = vpop.f32.mrb[15].mxu0  ;;  %v692_v13 = vmax.f32 %v650_v10, 0.0 }
 0x10c   : > { %3035 = vmatprep.mubr.msk.f32.mxu1 %vm706_vm1, %v675_v37  ;;  %v575_v43 = vadd.f32 %v3753_v47, %v574_v41  ;;  %v3008_v51 = vpop.f32.mrb[14].mxu1  ;;  %v691_v11 = vmax.f32 %v645_v8, 0.0 }
 0x10d   : > { %3036 = vmatmul.mubr.msk.f32.gmra.mrb[28].mxu1 %vm706_vm1, %v676_v36  ;;  %v678_v45 = vmax.f32 %v580_v40, 0.0  ;;  %v654_v52 = vpop.f32.mrb[15].mxu1  ;;  %v660_v14 = vadd.f32 %v3008_v51, %v3753_v47 }
 0x10e   : > { %v677_v48 = vmax.f32 %v575_v43, 0.0  ;;  %v655_v12 = vadd.f32 %v3753_v47, %v654_v52 }
 0x10f   : > { %v694_v16 = vmax.f32 %v660_v14, 0.0 }
 0x110   : > { %3038 = vmatprep.mubr.msk.f32.mxu1 %vm706_vm1, %v677_v48  ;;  %v693_v15 = vmax.f32 %v655_v12, 0.0 }
 0x111   : > { %3039 = vmatmul.mubr.msk.f32.gmra.mrb[30].mxu1 %vm706_vm1, %v678_v45 }
 0x112   : > { %3041 = vmatprep.mubr.msk.f32.mxu1 %vm706_vm1, %v679_v49 }
 0x115   : > { %3042 = vmatmul.mubr.msk.f32.gmra.mrb[32].mxu1 %vm706_vm1, %v680_v53 }
 0x116   : > { %3044 = vmatprep.mubr.msk.f32.mxu1 %vm706_vm1, %v681_v55 }
 0x119   : > { %3045 = vmatmul.mubr.msk.f32.gmra.mrb[34].mxu1 %vm706_vm1, %v682_v57 }
 0x11a   : > { %3047 = vmatprep.mubr.msk.f32.mxu1 %vm706_vm1, %v683_v59 }
 0x11d   : > { %3048 = vmatmul.mubr.msk.f32.gmra.mrb[36].mxu1 %vm706_vm1, %v684_v61 }
 0x11e   : > { %3050 = vmatprep.mubr.msk.f32.mxu1 %vm706_vm1, %v685_v63 }
 0x121   : > { %3051 = vmatmul.mubr.msk.f32.gmra.mrb[38].mxu1 %vm706_vm1, %v686_v1 }
 0x122   : > { %3053 = vmatprep.mubr.msk.f32.mxu1 %vm706_vm1, %v687_v3 }
 0x125   : > { %3054 = vmatmul.mubr.msk.f32.gmra.mrb[40].mxu1 %vm706_vm1, %v688_v5 }
 0x126   : > { %3056 = vmatprep.mubr.msk.f32.mxu1 %vm706_vm1, %v689_v7 }
 0x129   : > { %3057 = vmatmul.mubr.msk.f32.gmra.mrb[42].mxu1 %vm706_vm1, %v690_v9 }
 0x12a   : > { %3059 = vmatprep.mubr.msk.f32.mxu1 %vm706_vm1, %v691_v11 }
 0x12d   : > { %3060 = vmatmul.mubr.msk.f32.gmra.mrb[44].mxu1 %vm706_vm1, %v692_v13 }
 0x12e   : > { %3062 = vmatprep.mubr.msk.f32.mxu1 %vm706_vm1, %v693_v15 }
 0x131   : > { %3063 = vmatmul.mubr.msk.f32.gmra.mrb[46].mxu1 %vm706_vm1, %v694_v16 }
 0x1c8   : > { %v3019_v18 = vpop.f32.mrb[16].mxu1 }
 0x1c9   : > { %v875_v19 = vadd.f32 %v3019_v18, %v3828_v17  ;;  %v869_v20 = vpop.f32.mrb[17].mxu1 }
 0x1ca   : > { %v870_v47 = vadd.f32 %v3828_v17, %v869_v20 }
 0x1cb   : > { %v1029_v23 = vmax.f32 %v875_v19, 0.0 }
 0x1cc   : > { %v1028_v21 = vmax.f32 %v870_v47, 0.0  ;;  %v3022_v22 = vpop.f32.mrb[18].mxu1 }
 0x1cd   : > { %v885_v24 = vadd.f32 %v3022_v22, %v3828_v17  ;;  %v879_v25 = vpop.f32.mrb[19].mxu1 }
 0x1ce   : > { %v880_v26 = vadd.f32 %v3828_v17, %v879_v25  ;;  %3073 = vmatprep.mubr.msk.f32.mxu0 %vm706_vm1, %v1028_v21 }
 0x1cf   : > { %v1031_v27 = vmax.f32 %v885_v24, 0.0  ;;  %3074 = vmatmul.mubr.msk.f32.vlgmr.msra.gmra.mrb[16].mxu0 %vm706_vm1, %v1029_v23 }
 0x1d0   : > { %v1030_v28 = vmax.f32 %v880_v26, 0.0  ;;  %v3025_v29 = vpop.f32.mrb[20].mxu1 }
 0x1d1   : > { %v895_v30 = vadd.f32 %v3025_v29, %v3828_v17  ;;  %v889_v31 = vpop.f32.mrb[21].mxu1 }
 0x1d2   : > { %3076 = vmatprep.mubr.msk.f32.mxu0 %vm706_vm1, %v1030_v28  ;;  %v890_v32 = vadd.f32 %v3828_v17, %v889_v31 }
 0x1d3   : > { %3077 = vmatmul.mubr.msk.f32.gmra.mrb[18].mxu0 %vm706_vm1, %v1031_v27  ;;  %v1033_v33 = vmax.f32 %v895_v30, 0.0 }
 0x1d4   : > { %v1032_v34 = vmax.f32 %v890_v32, 0.0  ;;  %v3028_v35 = vpop.f32.mrb[22].mxu1 }
 0x1d5   : > { %v905_v36 = vadd.f32 %v3028_v35, %v3828_v17  ;;  %v899_v37 = vpop.f32.mrb[23].mxu1 }
 0x1d6   : > { %3079 = vmatprep.mubr.msk.f32.mxu0 %vm706_vm1, %v1032_v34  ;;  %v900_v38 = vadd.f32 %v3828_v17, %v899_v37 }
 0x1d7   : > { %3080 = vmatmul.mubr.msk.f32.gmra.mrb[20].mxu0 %vm706_vm1, %v1033_v33  ;;  %v1035_v39 = vmax.f32 %v905_v36, 0.0 }
 0x1d8   : > { %v1034_v40 = vmax.f32 %v900_v38, 0.0  ;;  %v3031_v41 = vpop.f32.mrb[24].mxu1 }
 0x1d9   : > { %v915_v42 = vadd.f32 %v3031_v41, %v3828_v17  ;;  %v909_v43 = vpop.f32.mrb[25].mxu1 }
 0x1da   : > { %3082 = vmatprep.mubr.msk.f32.mxu0 %vm706_vm1, %v1034_v40  ;;  %v910_v44 = vadd.f32 %v3828_v17, %v909_v43 }
 0x1db   : > { %3083 = vmatmul.mubr.msk.f32.gmra.mrb[22].mxu0 %vm706_vm1, %v1035_v39  ;;  %v1037_v45 = vmax.f32 %v915_v42, 0.0 }
 0x1dc   : > { %v1036_v46 = vmax.f32 %v910_v44, 0.0  ;;  %v3034_v48 = vpop.f32.mrb[26].mxu1 }
 0x1dd   : > { %v925_v49 = vadd.f32 %v3034_v48, %v3828_v17  ;;  %v919_v50 = vpop.f32.mrb[27].mxu1 }
 0x1de   : > { %3085 = vmatprep.mubr.msk.f32.mxu0 %vm706_vm1, %v1036_v46  ;;  %v920_v51 = vadd.f32 %v3828_v17, %v919_v50 }
 0x1df   : > { %3086 = vmatmul.mubr.msk.f32.gmra.mrb[24].mxu0 %vm706_vm1, %v1037_v45  ;;  %v1039_v52 = vmax.f32 %v925_v49, 0.0 }
 0x1e0   : > { %v1038_v53 = vmax.f32 %v920_v51, 0.0  ;;  %v3037_v54 = vpop.f32.mrb[28].mxu1  ;;  %v3897_v51 = vld [vmem:[%s4932_s6] ss:$0 sm:$0xff] }
 0x1e1   : > { %v935_v55 = vadd.f32 %v3037_v54, %v3828_v17  ;;  %v929_v56 = vpop.f32.mrb[29].mxu1 }
 0x1e2   : > { %3088 = vmatprep.mubr.msk.f32.mxu0 %vm706_vm1, %v1038_v53  ;;  %v930_v57 = vadd.f32 %v3828_v17, %v929_v56 }
 0x1e3   : > { %3089 = vmatmul.mubr.msk.f32.gmra.mrb[26].mxu0 %vm706_vm1, %v1039_v52  ;;  %v1041_v58 = vmax.f32 %v935_v55, 0.0 }
 0x1e4   : > { %v1040_v59 = vmax.f32 %v930_v57, 0.0  ;;  %v3040_v60 = vpop.f32.mrb[30].mxu1 }
 0x1e5   : > { %v945_v61 = vadd.f32 %v3040_v60, %v3828_v17  ;;  %v939_v62 = vpop.f32.mrb[31].mxu1 }
 0x1e6   : > { %3091 = vmatprep.mubr.msk.f32.mxu0 %vm706_vm1, %v1040_v59  ;;  %v940_v63 = vadd.f32 %v3828_v17, %v939_v62 }
 0x1e7   : > { %3092 = vmatmul.mubr.msk.f32.gmra.mrb[28].mxu0 %vm706_vm1, %v1041_v58  ;;  %v1043_v0 = vmax.f32 %v945_v61, 0.0 }
 0x1e8   : > { %v1042_v1 = vmax.f32 %v940_v63, 0.0  ;;  %v3043_v2 = vpop.f32.mrb[32].mxu1 }
 0x1e9   : > { %v955_v3 = vadd.f32 %v3043_v2, %v3828_v17  ;;  %v949_v4 = vpop.f32.mrb[33].mxu1 }
 0x1ea   : > { %3094 = vmatprep.mubr.msk.f32.mxu0 %vm706_vm1, %v1042_v1  ;;  %v950_v5 = vadd.f32 %v3828_v17, %v949_v4 }
 0x1eb   : > { %3095 = vmatmul.mubr.msk.f32.gmra.mrb[30].mxu0 %vm706_vm1, %v1043_v0  ;;  %v1045_v6 = vmax.f32 %v955_v3, 0.0 }
 0x1ec   : > { %v1044_v7 = vmax.f32 %v950_v5, 0.0  ;;  %v3046_v8 = vpop.f32.mrb[34].mxu1 }
 0x1ed   : > { %v965_v9 = vadd.f32 %v3046_v8, %v3828_v17  ;;  %v959_v10 = vpop.f32.mrb[35].mxu1 }
 0x1ee   : > { %3097 = vmatprep.mubr.msk.f32.mxu0 %vm706_vm1, %v1044_v7  ;;  %v960_v11 = vadd.f32 %v3828_v17, %v959_v10 }
 0x1ef   : > { %3098 = vmatmul.mubr.msk.f32.gmra.mrb[32].mxu0 %vm706_vm1, %v1045_v6  ;;  %v1047_v12 = vmax.f32 %v965_v9, 0.0 }
 0x1f0   : > { %v1046_v13 = vmax.f32 %v960_v11, 0.0  ;;  %v3049_v14 = vpop.f32.mrb[36].mxu1 }
 0x1f1   : > { %v975_v15 = vadd.f32 %v3049_v14, %v3828_v17  ;;  %v969_v16 = vpop.f32.mrb[37].mxu1 }
 0x1f2   : > { %3100 = vmatprep.mubr.msk.f32.mxu0 %vm706_vm1, %v1046_v13  ;;  %v970_v18 = vadd.f32 %v3828_v17, %v969_v16 }
 0x1f3   : > { %3101 = vmatmul.mubr.msk.f32.gmra.mrb[34].mxu0 %vm706_vm1, %v1047_v12  ;;  %v1049_v19 = vmax.f32 %v975_v15, 0.0 }
 0x1f4   : > { %v1048_v20 = vmax.f32 %v970_v18, 0.0  ;;  %v3052_v47 = vpop.f32.mrb[38].mxu1 }
 0x1f5   : > { %v985_v21 = vadd.f32 %v3052_v47, %v3828_v17  ;;  %v979_v22 = vpop.f32.mrb[39].mxu1 }
 0x1f6   : > { %3103 = vmatprep.mubr.msk.f32.mxu0 %vm706_vm1, %v1048_v20  ;;  %v980_v23 = vadd.f32 %v3828_v17, %v979_v22 }
 0x1f7   : > { %3104 = vmatmul.mubr.msk.f32.gmra.mrb[36].mxu0 %vm706_vm1, %v1049_v19  ;;  %v1051_v24 = vmax.f32 %v985_v21, 0.0 }
 0x1f8   : > { %v1050_v25 = vmax.f32 %v980_v23, 0.0  ;;  %v3055_v26 = vpop.f32.mrb[40].mxu1 }
 0x1f9   : > { %v995_v27 = vadd.f32 %v3055_v26, %v3828_v17  ;;  %v989_v28 = vpop.f32.mrb[41].mxu1 }
 0x1fa   : > { %3106 = vmatprep.mubr.msk.f32.mxu0 %vm706_vm1, %v1050_v25  ;;  %v990_v29 = vadd.f32 %v3828_v17, %v989_v28 }
 0x1fb   : > { %3107 = vmatmul.mubr.msk.f32.gmra.mrb[38].mxu0 %vm706_vm1, %v1051_v24  ;;  %v1053_v30 = vmax.f32 %v995_v27, 0.0 }
 0x1fc   : > { %v1052_v31 = vmax.f32 %v990_v29, 0.0  ;;  %v3058_v32 = vpop.f32.mrb[42].mxu1 }
 0x1fd   : > { %v1005_v33 = vadd.f32 %v3058_v32, %v3828_v17  ;;  %v999_v34 = vpop.f32.mrb[43].mxu1 }
 0x1fe   : > { %3109 = vmatprep.mubr.msk.f32.mxu0 %vm706_vm1, %v1052_v31  ;;  %v1000_v35 = vadd.f32 %v3828_v17, %v999_v34 }
 0x1ff   : > { %3110 = vmatmul.mubr.msk.f32.gmra.mrb[40].mxu0 %vm706_vm1, %v1053_v30  ;;  %v1055_v36 = vmax.f32 %v1005_v33, 0.0 }
 0x200   : > { %v1054_v37 = vmax.f32 %v1000_v35, 0.0  ;;  %v3061_v38 = vpop.f32.mrb[44].mxu1 }
 0x201   : > { %v1015_v39 = vadd.f32 %v3061_v38, %v3828_v17  ;;  %v1009_v40 = vpop.f32.mrb[45].mxu1 }
 0x202   : > { %3112 = vmatprep.mubr.msk.f32.mxu0 %vm706_vm1, %v1054_v37  ;;  %v1010_v41 = vadd.f32 %v3828_v17, %v1009_v40 }
 0x203   : > { %3113 = vmatmul.mubr.msk.f32.gmra.mrb[42].mxu0 %vm706_vm1, %v1055_v36  ;;  %v1057_v42 = vmax.f32 %v1015_v39, 0.0 }
 0x204   : > { %v1056_v43 = vmax.f32 %v1010_v41, 0.0  ;;  %v3064_v44 = vpop.f32.mrb[46].mxu1 }
 0x205   : > { %v1025_v45 = vadd.f32 %v3064_v44, %v3828_v17  ;;  %v1019_v46 = vpop.f32.mrb[47].mxu1 }
 0x206   : > { %3115 = vmatprep.mubr.msk.f32.mxu0 %vm706_vm1, %v1056_v43  ;;  %v1020_v48 = vadd.f32 %v3828_v17, %v1019_v46 }
 0x207   : > { %3116 = vmatmul.mubr.msk.f32.gmra.mrb[44].mxu0 %vm706_vm1, %v1057_v42  ;;  %v1059_v49 = vmax.f32 %v1025_v45, 0.0 }
 0x208   : > { %v1058_v50 = vmax.f32 %v1020_v48, 0.0 }
 0x20a   : > { %3118 = vmatprep.mubr.msk.f32.mxu0 %vm706_vm1, %v1058_v50 }
 0x20b   : > { %3119 = vmatmul.mubr.msk.f32.gmra.mrb[46].mxu0 %vm706_vm1, %v1059_v49 }
 0x2a2   : > { %v3075_v52 = vpop.f32.mrb[16].mxu0 }
 0x2a3   : > { %v3900_v53 = vadd.f32 %v3075_v52, %v3897_v51  ;;  %v1233_v17 = vpop.f32.mrb[17].mxu0 }
 0x2a4   : > { %v3903_v54 = vadd.f32 %v3897_v51, %v1233_v17 }
 0x2a5   : > { %5005 = vst [vmem:[#allocation3_spill] sm:$0xff] %v3900_v53  ;;  %v1781_v55 = vsel %vm1777_vm2, %v3900_v53, -inf  ;;  %v1396_v56 = vsel %vm1392_vm3, %v3900_v53, -inf }
 0x2a6   : > { %1782 = vmax.xlane.f32.xlu1 %v1781_v55  ;;  %1397 = vmax.xlane.f32.xlu0 %v1396_v56  ;;  %v3078_v57 = vpop.f32.mrb[18].mxu0  ;;  %v1393_v61 = vsel %vm1392_vm3, %v3903_v54, -inf  ;;  %v1778_v2 = vsel %vm1777_vm2, %v3903_v54, -inf }
 0x2a7   : > { %v3910_v58 = vadd.f32 %v3078_v57, %v3897_v51  ;;  %v1243_v59 = vpop.f32.mrb[19].mxu0 }
 0x2a8   : > { %v3919_v0 = vadd.f32 %v3897_v51, %v1243_v59 }
 0x2a9   : > { %v1402_v60 = vsel %vm1392_vm3, %v3910_v58, -inf  ;;  %v1787_v63 = vsel %vm1777_vm2, %v3910_v58, -inf }
 0x2aa   : > { %1403 = vmax.xlane.f32.xlu1 %v1402_v60  ;;  %1394 = vmax.xlane.f32.xlu0 %v1393_v61  ;;  %v3081_v62 = vpop.f32.mrb[20].mxu0  ;;  %v1399_v6 = vsel %vm1392_vm3, %v3919_v0, -inf  ;;  %v1784_v7 = vsel %vm1777_vm2, %v3919_v0, -inf }
 0x2ab   : > { %v1253_v1 = vpop.f32.mrb[21].mxu0  ;;  %v3924_v4 = vadd.f32 %v3081_v62, %v3897_v51 }
 0x2ac   : > { %v3927_v5 = vadd.f32 %v3897_v51, %v1253_v1 }
 0x2ad   : > { %5006 = vst [vmem:[#allocation4_spill] sm:$0xff] %v3924_v4  ;;  %v1408_v10 = vsel %vm1392_vm3, %v3924_v4, -inf  ;;  %v1793_v16 = vsel %vm1777_vm2, %v3924_v4, -inf }
 0x2ae   : > { %1788 = vmax.xlane.f32.xlu1 %v1787_v63  ;;  %1779 = vmax.xlane.f32.xlu0 %v1778_v2  ;;  %v3084_v3 = vpop.f32.mrb[22].mxu0  ;;  %v1405_v11 = vsel %vm1392_vm3, %v3927_v5, -inf  ;;  %v1790_v18 = vsel %vm1777_vm2, %v3927_v5, -inf }
 0x2af   : > { %v1263_v8 = vpop.f32.mrb[23].mxu0  ;;  %v3938_v14 = vadd.f32 %v3084_v3, %v3897_v51 }
 0x2b0   : > { %v3941_v15 = vadd.f32 %v3897_v51, %v1263_v8 }
 0x2b1   : > { %5007 = vst [vmem:[#allocation5_spill] sm:$0xff] %v3938_v14  ;;  %v1414_v47 = vsel %vm1392_vm3, %v3938_v14, -inf  ;;  %v1799_v26 = vsel %vm1777_vm2, %v3938_v14, -inf }
 0x2b2   : > { %1400 = vmax.xlane.f32.xlu1 %v1399_v6  ;;  %1785 = vmax.xlane.f32.xlu0 %v1784_v7  ;;  %v3087_v9 = vpop.f32.mrb[24].mxu0  ;;  %v1411_v21 = vsel %vm1392_vm3, %v3941_v15, -inf  ;;  %v1796_v27 = vsel %vm1777_vm2, %v3941_v15, -inf }
 0x2b3   : > { %v1273_v12 = vpop.f32.mrb[25].mxu0  ;;  %v3952_v24 = vadd.f32 %v3087_v9, %v3897_v51 }
 0x2b4   : > { %v3955_v25 = vadd.f32 %v3897_v51, %v1273_v12 }
 0x2b5   : > { %5008 = vst [vmem:[#allocation6_spill] sm:$0xff] %v3952_v24  ;;  %v1420_v30 = vsel %vm1392_vm3, %v3952_v24, -inf  ;;  %v1805_v35 = vsel %vm1777_vm2, %v3952_v24, -inf }
 0x2b6   : > { %1409 = vmax.xlane.f32.xlu1 %v1408_v10  ;;  %1406 = vmax.xlane.f32.xlu0 %v1405_v11  ;;  %v3090_v13 = vpop.f32.mrb[26].mxu0  ;;  %v1417_v31 = vsel %vm1392_vm3, %v3955_v25, -inf  ;;  %v1802_v39 = vsel %vm1777_vm2, %v3955_v25, -inf }
 0x2b7   : > { %v1283_v19 = vpop.f32.mrb[27].mxu0  ;;  %v3974_v37 = vadd.f32 %v3090_v13, %v3897_v51 }
 0x2b8   : > { %v3977_v38 = vadd.f32 %v3897_v51, %v1283_v19 }
 0x2b9   : > { %5011 = vst [vmem:[#allocation9_spill] sm:$0xff] %v3974_v37  ;;  %v1426_v44 = vsel %vm1392_vm3, %v3974_v37, -inf  ;;  %v1811_v50 = vsel %vm1777_vm2, %v3974_v37, -inf }
 0x2ba   : > { %1794 = vmax.xlane.f32.xlu1 %v1793_v16  ;;  %1791 = vmax.xlane.f32.xlu0 %v1790_v18  ;;  %v3093_v20 = vpop.f32.mrb[28].mxu0  ;;  %v1423_v45 = vsel %vm1392_vm3, %v3977_v38, -inf  ;;  %v1808_v56 = vsel %vm1777_vm2, %v3977_v38, -inf }
 0x2bb   : > { %v1293_v22 = vpop.f32.mrb[29].mxu0  ;;  %v4000_v17 = vadd.f32 %v3093_v20, %v3897_v51 }
 0x2bc   : > { %v4003_v55 = vadd.f32 %v3897_v51, %v1293_v22 }
 0x2bd   : > { %5016 = vst [vmem:[#allocation14_spill] sm:$0xff] %v4000_v17  ;;  %v1432_v62 = vsel %vm1392_vm3, %v4000_v17, -inf  ;;  %v1817_v6 = vsel %vm1777_vm2, %v4000_v17, -inf }
 0x2be   : > { %1415 = vmax.xlane.f32.xlu1 %v1414_v47  ;;  %1412 = vmax.xlane.f32.xlu0 %v1411_v21  ;;  %v3096_v23 = vpop.f32.mrb[30].mxu0  ;;  %v1429_v63 = vsel %vm1392_vm3, %v4003_v55, -inf  ;;  %v1814_v10 = vsel %vm1777_vm2, %v4003_v55, -inf }
 0x2bf   : > { %v1303_v28 = vpop.f32.mrb[31].mxu0  ;;  %v4026_v8 = vadd.f32 %v3096_v23, %v3897_v51 }
 0x2c0   : > { %v4029_v9 = vadd.f32 %v3897_v51, %v1303_v28 }
 0x2c1   : > { %5021 = vst [vmem:[#allocation19_spill] sm:$0xff] %v4026_v8  ;;  %v1438_v18 = vsel %vm1392_vm3, %v4026_v8, -inf  ;;  %v1823_v23 = vsel %vm1777_vm2, %v4026_v8, -inf }
 0x2c2   : > { %1800 = vmax.xlane.f32.xlu1 %v1799_v26  ;;  %1797 = vmax.xlane.f32.xlu0 %v1796_v27  ;;  %v3099_v29 = vpop.f32.mrb[32].mxu0  ;;  %5022 = vst [vmem:[#allocation20_spill] sm:$0xff] %v4029_v9  ;;  %v1435_v19 = vsel %vm1392_vm3, %v4029_v9, -inf  ;;  %v1820_v26 = vsel %vm1777_vm2, %v4029_v9, -inf }
 0x2c3   : > { %v3966_v32 = vadd.f32 %v3099_v29, %v3897_v51  ;;  %v1313_v33 = vpop.f32.mrb[33].mxu0 }
 0x2c4   : > { %v3969_v34 = vadd.f32 %v3897_v51, %v1313_v33 }
 0x2c5   : > { %5009 = vst [vmem:[#allocation7_spill] sm:$0xff] %v3966_v32  ;;  %v1829_v33 = vsel %vm1777_vm2, %v3966_v32, -inf }
 0x2c6   : > { %5010 = vst [vmem:[#allocation8_spill] sm:$0xff] %v3969_v34  ;;  %1421 = vmax.xlane.f32.xlu1 %v1420_v30  ;;  %1418 = vmax.xlane.f32.xlu0 %v1417_v31  ;;  %v3102_v36 = vpop.f32.mrb[34].mxu0  ;;  %v1444_v30 = vsel %vm1392_vm3, %v3966_v32, -inf  ;;  %v1441_v31 = vsel %vm1392_vm3, %v3969_v34, -inf }
 0x2c7   : > { %v3982_v40 = vadd.f32 %v3102_v36, %v3897_v51  ;;  %v1323_v41 = vpop.f32.mrb[35].mxu0 }
 0x2c8   : > { %v3985_v42 = vadd.f32 %v3897_v51, %v1323_v41 }
 0x2c9   : > { %5012 = vst [vmem:[#allocation10_spill] sm:$0xff] %v3982_v40 }
 0x2ca   : > { %5013 = vst [vmem:[#allocation11_spill] sm:$0xff] %v3985_v42  ;;  %1806 = vmax.xlane.f32.xlu1 %v1805_v35  ;;  %1803 = vmax.xlane.f32.xlu0 %v1802_v39  ;;  %v3105_v43 = vpop.f32.mrb[36].mxu0  ;;  %v1826_v35 = vsel %vm1777_vm2, %v3969_v34, -inf  ;;  %v1447_v36 = vsel %vm1392_vm3, %v3985_v42, -inf  ;;  %v1835_v39 = vsel %vm1777_vm2, %v3982_v40, -inf  ;;  %v1832_v41 = vsel %vm1777_vm2, %v3985_v42, -inf }
 0x2cb   : > { %v3992_v46 = vadd.f32 %v3105_v43, %v3897_v51  ;;  %v1333_v48 = vpop.f32.mrb[37].mxu0 }
 0x2cc   : > { %v3995_v49 = vadd.f32 %v3897_v51, %v1333_v48 }
 0x2cd   : > { %5014 = vst [vmem:[#allocation12_spill] sm:$0xff] %v3992_v46  ;;  %v1456_v43 = vsel %vm1392_vm3, %v3992_v46, -inf }
 0x2ce   : > { %5015 = vst [vmem:[#allocation13_spill] sm:$0xff] %v3995_v49  ;;  %1427 = vmax.xlane.f32.xlu1 %v1426_v44  ;;  %1424 = vmax.xlane.f32.xlu0 %v1423_v45  ;;  %v3108_v52 = vpop.f32.mrb[38].mxu0  ;;  %v1453_v44 = vsel %vm1392_vm3, %v3995_v49, -inf  ;;  %v1841_v45 = vsel %vm1777_vm2, %v3992_v46, -inf  ;;  %v1838_v48 = vsel %vm1777_vm2, %v3995_v49, -inf }
 0x2cf   : > { %v4008_v57 = vadd.f32 %v3108_v52, %v3897_v51  ;;  %v1343_v59 = vpop.f32.mrb[39].mxu0 }
 0x2d0   : > { %v4011_v60 = vadd.f32 %v3897_v51, %v1343_v59 }
 0x2d1   : > { %5017 = vst [vmem:[#allocation15_spill] sm:$0xff] %v4008_v57 }
 0x2d2   : > { %5018 = vst [vmem:[#allocation16_spill] sm:$0xff] %v4011_v60  ;;  %1812 = vmax.xlane.f32.xlu1 %v1811_v50  ;;  %1809 = vmax.xlane.f32.xlu0 %v1808_v56  ;;  %v3111_v61 = vpop.f32.mrb[40].mxu0  ;;  %v1462_v50 = vsel %vm1392_vm3, %v4008_v57, -inf  ;;  %v1459_v52 = vsel %vm1392_vm3, %v4011_v60, -inf  ;;  %v1847_v56 = vsel %vm1777_vm2, %v4008_v57, -inf  ;;  %v1844_v59 = vsel %vm1777_vm2, %v4011_v60, -inf }
 0x2d3   : > { %v4018_v1 = vadd.f32 %v3111_v61, %v3897_v51  ;;  %v1353_v2 = vpop.f32.mrb[41].mxu0 }
 0x2d4   : > { %v4021_v3 = vadd.f32 %v3897_v51, %v1353_v2 }
 0x2d5   : > { %5019 = vst [vmem:[#allocation17_spill] sm:$0xff] %v4018_v1  ;;  %v1468_v61 = vsel %vm1392_vm3, %v4018_v1, -inf }
 0x2d6   : > { %5020 = vst [vmem:[#allocation18_spill] sm:$0xff] %v4021_v3  ;;  %1433 = vmax.xlane.f32.xlu1 %v1432_v62  ;;  %1430 = vmax.xlane.f32.xlu0 %v1429_v63  ;;  %v3114_v7 = vpop.f32.mrb[42].mxu0  ;;  %v1465_v62 = vsel %vm1392_vm3, %v4021_v3, -inf  ;;  %v1853_v63 = vsel %vm1777_vm2, %v4018_v1, -inf  ;;  %v1850_v2 = vsel %vm1777_vm2, %v4021_v3, -inf }
 0x2d7   : > { %v4034_v11 = vadd.f32 %v3114_v7, %v3897_v51  ;;  %v1363_v12 = vpop.f32.mrb[43].mxu0 }
 0x2d8   : > { %v4037_v13 = vadd.f32 %v3897_v51, %v1363_v12 }
 0x2d9   : > { %5023 = vst [vmem:[#allocation21_spill] sm:$0xff] %v4034_v11 }
 0x2da   : > { %5024 = vst [vmem:[#allocation22_spill] sm:$0xff] %v4037_v13  ;;  %1818 = vmax.xlane.f32.xlu1 %v1817_v6  ;;  %1815 = vmax.xlane.f32.xlu0 %v1814_v10  ;;  %v3117_v16 = vpop.f32.mrb[44].mxu0  ;;  %v1474_v6 = vsel %vm1392_vm3, %v4034_v11, -inf  ;;  %v1471_v7 = vsel %vm1392_vm3, %v4037_v13, -inf  ;;  %v1859_v10 = vsel %vm1777_vm2, %v4034_v11, -inf  ;;  %v1856_v12 = vsel %vm1777_vm2, %v4037_v13, -inf }
 0x2db   : > { %v4044_v20 = vadd.f32 %v3117_v16, %v3897_v51  ;;  %v1373_v47 = vpop.f32.mrb[45].mxu0 }
 0x2dc   : > { %v4047_v21 = vadd.f32 %v3897_v51, %v1373_v47 }
 0x2dd   : > { %5025 = vst [vmem:[#allocation23_spill] sm:$0xff] %v4044_v20  ;;  %v1480_v16 = vsel %vm1392_vm3, %v4044_v20, -inf }
 0x2de   : > { %5026 = vst [vmem:[#allocation24_spill] sm:$0xff] %v4047_v21  ;;  %1439 = vmax.xlane.f32.xlu1 %v1438_v18  ;;  %1436 = vmax.xlane.f32.xlu0 %v1435_v19  ;;  %v3120_v22 = vpop.f32.mrb[46].mxu0  ;;  %v1477_v18 = vsel %vm1392_vm3, %v4047_v21, -inf  ;;  %v1865_v19 = vsel %vm1777_vm2, %v4044_v20, -inf  ;;  %v1862_v47 = vsel %vm1777_vm2, %v4047_v21, -inf }
 0x2df   : > { %v4054_v27 = vadd.f32 %v3120_v22, %v3897_v51  ;;  %v1383_v28 = vpop.f32.mrb[47].mxu0 }
 0x2e0   : > { %v4057_v29 = vadd.f32 %v3897_v51, %v1383_v28  ;;  %v1450_v51 = vsel %vm1392_vm3, %v3982_v40, -inf }
 0x2e1   : > { %5027 = vst [vmem:[#allocation25_spill] sm:$0xff] %v4054_v27  ;;  %v1486_v22 = vsel %vm1392_vm3, %v4054_v27, -inf }
 0x2e2   : > { %5028 = vst [vmem:[#allocation26_spill] sm:$0xff] %v4057_v29  ;;  %1824 = vmax.xlane.f32.xlu1 %v1823_v23  ;;  %1821 = vmax.xlane.f32.xlu0 %v1820_v26  ;;  %v1483_v23 = vsel %vm1392_vm3, %v4057_v29, -inf  ;;  %v1871_v26 = vsel %vm1777_vm2, %v4054_v27, -inf  ;;  %v1868_v28 = vsel %vm1777_vm2, %v4057_v29, -inf }
 0x2e6   : > { %1445 = vmax.xlane.f32.xlu1 %v1444_v30  ;;  %1442 = vmax.xlane.f32.xlu0 %v1441_v31 }
 0x2ea   : > { %1830 = vmax.xlane.f32.xlu1 %v1829_v33  ;;  %1827 = vmax.xlane.f32.xlu0 %v1826_v35 }
 0x2ee   : > { %1451 = vmax.xlane.f32.xlu1 %v1450_v51  ;;  %1448 = vmax.xlane.f32.xlu0 %v1447_v36 }
 0x2f2   : > { %1836 = vmax.xlane.f32.xlu1 %v1835_v39  ;;  %1833 = vmax.xlane.f32.xlu0 %v1832_v41 }
 0x2f6   : > { %1457 = vmax.xlane.f32.xlu1 %v1456_v43  ;;  %1454 = vmax.xlane.f32.xlu0 %v1453_v44 }
 0x2fa   : > { %1842 = vmax.xlane.f32.xlu1 %v1841_v45  ;;  %1839 = vmax.xlane.f32.xlu0 %v1838_v48 }
 0x2fe   : > { %1463 = vmax.xlane.f32.xlu1 %v1462_v50  ;;  %1460 = vmax.xlane.f32.xlu0 %v1459_v52 }
 0x302   : > { %1848 = vmax.xlane.f32.xlu1 %v1847_v56  ;;  %1845 = vmax.xlane.f32.xlu0 %v1844_v59 }
 0x306   : > { %1469 = vmax.xlane.f32.xlu1 %v1468_v61  ;;  %1466 = vmax.xlane.f32.xlu0 %v1465_v62 }
 0x30a   : > { %1854 = vmax.xlane.f32.xlu1 %v1853_v63  ;;  %1851 = vmax.xlane.f32.xlu0 %v1850_v2 }
 0x30e   : > { %1475 = vmax.xlane.f32.xlu1 %v1474_v6  ;;  %1472 = vmax.xlane.f32.xlu0 %v1471_v7 }
 0x312   : > { %1860 = vmax.xlane.f32.xlu1 %v1859_v10  ;;  %1857 = vmax.xlane.f32.xlu0 %v1856_v12 }
 0x316   : > { %1481 = vmax.xlane.f32.xlu1 %v1480_v16  ;;  %1478 = vmax.xlane.f32.xlu0 %v1477_v18 }
 0x31a   : > { %1866 = vmax.xlane.f32.xlu1 %v1865_v19  ;;  %1863 = vmax.xlane.f32.xlu0 %v1862_v47 }
 0x31e   : > { %1487 = vmax.xlane.f32.xlu1 %v1486_v22  ;;  %1484 = vmax.xlane.f32.xlu0 %v1483_v23 }
 0x322   : > { %1872 = vmax.xlane.f32.xlu1 %v1871_v26  ;;  %1869 = vmax.xlane.f32.xlu0 %v1868_v28 }
 0x333   : > { %v4123_v30 = vpop.xlane.xlu1 %1782  ;;  %v4125_v31 = vpop.xlane.xlu0 %1397 }
 0x334   : > { %5029 = vst [vmem:[#allocation27_spill] sm:$0xff] %v4123_v30  ;;  %5030 = vst [vmem:[#allocation28_spill] sm:$0xff] %v4125_v31  ;;  %v1875_v33 = vsub.f32 %v3900_v53, %v4123_v30  ;;  %v1490_v50 = vsub.f32 %v3900_v53, %v4125_v31 }
 0x336   : > { %v1908_v35 = vmul.f32 1.442695, %v1875_v33  ;;  %v1523_v52 = vmul.f32 1.442695, %v1490_v50 }
 0x337   : > { %v4129_v51 = vpop.xlane.xlu0 %1394  ;;  %v4136_v44 = vpop.xlane.xlu1 %1403 }
 0x338   : > { %3232 = vpow2.f32 %v1908_v35  ;;  %v1489_v56 = vsub.f32 %v3903_v54, %v4129_v51 }
 0x33a   : > { %v1521_v61 = vmul.f32 1.442695, %v1489_v56 }
 0x33b   : > { %v4131_v36 = vpop.xlane.xlu0 %1779  ;;  %v4139_v48 = vpop.xlane.xlu1 %1788 }
 0x33c   : > { %v1874_v39 = vsub.f32 %v3903_v54, %v4131_v36  ;;  %v1877_v7 = vsub.f32 %v3910_v58, %v4139_v48 }
 0x33e   : > { %v1906_v41 = vmul.f32 1.442695, %v1874_v39  ;;  %v1912_v16 = vmul.f32 1.442695, %v1877_v7  ;;  %v1492_v39 = vsub.f32 %v3910_v58, %v4136_v44 }
 0x33f   : > { %v4145_v59 = vpop.xlane.xlu1 %1400  ;;  %v4149_v6 = vpop.xlane.xlu0 %1785 }
 0x340   : > { %3234 = vpow2.f32 %v1906_v41  ;;  %v1491_v62 = vsub.f32 %v3919_v0, %v4145_v59  ;;  %v1527_v41 = vmul.f32 1.442695, %v1492_v39  ;;  %v1876_v56 = vsub.f32 %v3919_v0, %v4149_v6 }
 0x341   : > { %3236 = vpow2.f32 %v1523_v52 }
 0x342   : > { %v3233_v43 = vpop.eup %3232  ;;  %3238 = vpow2.f32 %v1521_v61  ;;  %v1525_v63 = vmul.f32 1.442695, %v1491_v62 }
 0x343   : > { %2004 = vrot.lane.b32.xlu1 %v3233_v43, %s3576_s30  ;;  %v4154_v18 = vpop.xlane.xlu0 %1406  ;;  %v4168_v50 = vpop.xlane.xlu1 %1409 }
 0x344   : > { %3240 = vpow2.f32 %v1525_v63  ;;  %v1493_v43 = vsub.f32 %v3927_v5, %v4154_v18  ;;  %5031 = vst [vmem:[#allocation29_spill] sm:$0xff] %v4168_v50  ;;  %v1910_v63 = vmul.f32 1.442695, %v1876_v56 }
 0x345   : > { %3242 = vpow2.f32 %v1912_v16 }
 0x347   : > { %v4158_v23 = vpop.xlane.xlu0 %1791  ;;  %v4172_v61 = vpop.xlane.xlu1 %1794 }
 0x348   : > { %v1878_v26 = vsub.f32 %v3927_v5, %v4158_v23  ;;  %5032 = vst [vmem:[#allocation30_spill] sm:$0xff] %v4172_v61 }
 0x34a   : > { %v3235_v45 = vpop.eup %3234  ;;  %v1914_v28 = vmul.f32 1.442695, %v1878_v26 }
 0x34b   : > { %2002 = vrot.lane.b32.xlu0 %v3235_v45, %s3576_s30  ;;  %v3237_v2 = vpop.eup %3236  ;;  %v1529_v45 = vmul.f32 1.442695, %v1493_v43  ;;  %v4177_v7 = vpop.xlane.xlu0 %1412 }
 0x34c   : > { %v1588_v10 = vsel %vm1392_vm3, %v3237_v2, 0.0  ;;  %v3239_v12 = vpop.eup %3238  ;;  %3244 = vpow2.f32 %v1914_v28  ;;  %v1879_v2 = vsub.f32 %v3924_v4, %v4172_v61 }
 0x34d   : > { %v1585_v19 = vsel %vm1392_vm3, %v3239_v12, 0.0  ;;  %3246 = vpow2.f32 %v1527_v41  ;;  %v1495_v41 = vsub.f32 %v3941_v15, %v4177_v7 }
 0x34e   : > { %v3241_v47 = vpop.eup %3240  ;;  %3248 = vpow2.f32 %v1529_v45  ;;  %v1916_v12 = vmul.f32 1.442695, %v1879_v2  ;;  %v4191_v45 = vpop.xlane.xlu1 %1415 }
 0x34f   : > { %v1591_v22 = vsel %vm1392_vm3, %v3241_v47, 0.0  ;;  %v3243_v33 = vpop.eup %3242  ;;  %3250 = vpow2.f32 %v1910_v63  ;;  %v1533_v43 = vmul.f32 1.442695, %v1495_v41  ;;  %5033 = vst [vmem:[#allocation31_spill] sm:$0xff] %v4191_v45 }
 0x350   : > { %3252 = vpow2.f32 %v1916_v12 }
 0x356   : > { %v3245_v35 = vpop.eup %3244 }
 0x357   : > { %v3247_v52 = vpop.eup %3246 }
 0x358   : > { %v1594_v62 = vsel %vm1392_vm3, %v3247_v52, 0.0  ;;  %v4193_v52 = vpop.xlane.xlu1 %1800 }
 0x359   : > { %5034 = vst [vmem:[#allocation32_spill] sm:$0xff] %v4193_v52 }
 0x367   : > { %1589 = vadd.xlane.f32.xlu1 %v1588_v10  ;;  %v3249_v10 = vpop.eup %3248 }
 0x368   : > { %v1597_v16 = vsel %vm1392_vm3, %v3249_v10, 0.0  ;;  %v3251_v26 = vpop.eup %3250 }
 0x369   : > { %v3253_v28 = vpop.eup %3252 }
 0x36a   : > { %1586 = vadd.xlane.f32.xlu0 %v1585_v19  ;;  %v4180_v19 = vpop.xlane.xlu0 %1797 }
 0x36b   : > { %v1880_v47 = vsub.f32 %v3941_v15, %v4180_v19 }
 0x36e   : > { %1592 = vadd.xlane.f32.xlu0 %v1591_v22  ;;  %v1918_v22 = vmul.f32 1.442695, %v1880_v47  ;;  %v4197_v63 = vpop.xlane.xlu0 %1418 }
 0x36f   : > { %v1497_v41 = vsub.f32 %v3955_v25, %v4197_v63 }
 0x370   : > { %3254 = vpow2.f32 %v1918_v22 }
 0x372   : > { %v4201_v47 = vpop.xlane.xlu0 %1803 }
 0x373   : > { %v1882_v22 = vsub.f32 %v3955_v25, %v4201_v47 }
 0x378   : > { %2008 = vrot.lane.b32.xlu1 %v3243_v33, %s3576_s30 }
 0x37a   : > { %v3255_v33 = vpop.eup %3254 }
 0x384   : > { %2010 = vrot.lane.b32.xlu0 %v3245_v35, %s3576_s30  ;;  %v1494_v35 = vsub.f32 %v3924_v4, %v4168_v50 }
 0x386   : > { %v1531_v39 = vmul.f32 1.442695, %v1494_v35  ;;  %v1496_v35 = vsub.f32 %v3938_v14, %v4191_v45 }
 0x388   : > { %3256 = vpow2.f32 %v1531_v39  ;;  %v1535_v39 = vmul.f32 1.442695, %v1496_v35 }
 0x389   : > { %3258 = vpow2.f32 %v1533_v43  ;;  %v1537_v43 = vmul.f32 1.442695, %v1497_v41 }
 0x392   : > { %v3257_v56 = vpop.eup %3256 }
 0x393   : > { %v1600_v2 = vsel %vm1392_vm3, %v3257_v56, 0.0  ;;  %v3259_v10 = vpop.eup %3258  ;;  %v4211_v56 = vpop.xlane.xlu1 %1421 }
 0x394   : > { %5035 = vst [vmem:[#allocation33_spill] sm:$0xff] %v4211_v56 }
 0x39c   : > { %1595 = vadd.xlane.f32.xlu1 %v1594_v62  ;;  %v1881_v62 = vsub.f32 %v3938_v14, %v4193_v52 }
 0x39e   : > { %v1920_v12 = vmul.f32 1.442695, %v1881_v62  ;;  %v4213_v62 = vpop.xlane.xlu1 %1806 }
 0x39f   : > { %5036 = vst [vmem:[#allocation34_spill] sm:$0xff] %v4213_v62 }
 0x3a0   : > { %3260 = vpow2.f32 %v1920_v12  ;;  %v4217_v12 = vpop.xlane.xlu0 %1424 }
 0x3a3   : > { %1598 = vadd.xlane.f32.xlu0 %v1597_v16  ;;  %v1603_v16 = vsel %vm1392_vm3, %v3259_v10, 0.0  ;;  %v1883_v10 = vsub.f32 %v3952_v24, %v4213_v62 }
 0x3ad   : > { %2006 = vrot.lane.b32.xlu1 %v3251_v26, %s3576_s30  ;;  %v1922_v26 = vmul.f32 1.442695, %v1882_v22 }
 0x3af   : > { %3262 = vpow2.f32 %v1922_v26  ;;  %v1924_v26 = vmul.f32 1.442695, %v1883_v10 }
 0x3b0   : > { %3264 = vpow2.f32 %v1535_v39 }
 0x3b1   : > { %2012 = vrot.lane.b32.xlu1 %v3253_v28, %s3576_s30  ;;  %v3261_v28 = vpop.eup %3260  ;;  %3266 = vpow2.f32 %v1537_v43 }
 0x3b2   : > { %3268 = vpow2.f32 %v1924_v26  ;;  %v4231_v26 = vpop.xlane.xlu1 %1427 }
 0x3b3   : > { %5037 = vst [vmem:[#allocation35_spill] sm:$0xff] %v4231_v26 }
 0x3b9   : > { %2014 = vrot.lane.b32.xlu0 %v3255_v33, %s3576_s30  ;;  %v3263_v33 = vpop.eup %3262 }
 0x3d5   : > { %1601 = vadd.xlane.f32.xlu1 %v1600_v2  ;;  %v3265_v2 = vpop.eup %3264 }
 0x3d6   : > { %v3267_v22 = vpop.eup %3266 }
 0x3d7   : > { %v3269_v41 = vpop.eup %3268 }
 0x3d8   : > { %1604 = vadd.xlane.f32.xlu0 %v1603_v16  ;;  %v1606_v16 = vsel %vm1392_vm3, %v3265_v2, 0.0  ;;  %v1498_v2 = vsub.f32 %v3952_v24, %v4211_v56 }
 0x3da   : > { %v1539_v10 = vmul.f32 1.442695, %v1498_v2 }
 0x3e6   : > { %2016 = vrot.lane.b32.xlu1 %v3261_v28, %s3576_s30  ;;  %v1609_v28 = vsel %vm1392_vm3, %v3267_v22, 0.0 }
 0x3ee   : > { %2018 = vrot.lane.b32.xlu0 %v3263_v33, %s3576_s30  ;;  %v4221_v33 = vpop.xlane.xlu0 %1809 }
 0x3ef   : > { %v1884_v35 = vsub.f32 %v3977_v38, %v4221_v33 }
 0x3f1   : > { %v1926_v39 = vmul.f32 1.442695, %v1884_v35 }
 0x3f3   : > { %3270 = vpow2.f32 %v1926_v39 }
 0x3f4   : > { %3272 = vpow2.f32 %v1539_v10 }
 0x3fd   : > { %v3271_v43 = vpop.eup %3270 }
 0x3fe   : > { %v3273_v35 = vpop.eup %3272 }
 0x40a   : > { %1607 = vadd.xlane.f32.xlu1 %v1606_v16  ;;  %v1499_v16 = vsub.f32 %v3977_v38, %v4217_v12 }
 0x40c   : > { %v1541_v22 = vmul.f32 1.442695, %v1499_v16 }
 0x40d   : > { %1610 = vadd.xlane.f32.xlu0 %v1609_v28  ;;  %v4233_v28 = vpop.xlane.xlu1 %1812 }
 0x40e   : > { %3274 = vpow2.f32 %v1541_v22  ;;  %5038 = vst [vmem:[#allocation36_spill] sm:$0xff] %v4233_v28  ;;  %v1885_v39 = vsub.f32 %v3974_v37, %v4233_v28 }
 0x410   : > { %v1928_v2 = vmul.f32 1.442695, %v1885_v39 }
 0x412   : > { %3276 = vpow2.f32 %v1928_v2 }
 0x418   : > { %v3275_v24 = vpop.eup %3274 }
 0x419   : > { %v1615_v62 = vsel %vm1392_vm3, %v3275_v24, 0.0 }
 0x41b   : > { %2020 = vrot.lane.b32.xlu1 %v3269_v41, %s3576_s30  ;;  %v4237_v41 = vpop.xlane.xlu0 %1430 }
 0x41c   : > { %v3277_v56 = vpop.eup %3276  ;;  %v1501_v24 = vsub.f32 %v4003_v55, %v4237_v41 }
 0x41f   : > { %v4241_v10 = vpop.xlane.xlu0 %1815 }
 0x420   : > { %v1886_v16 = vsub.f32 %v4003_v55, %v4241_v10 }
 0x422   : > { %v1930_v22 = vmul.f32 1.442695, %v1886_v16 }
 0x423   : > { %2022 = vrot.lane.b32.xlu0 %v3271_v43, %s3576_s30  ;;  %v1612_v43 = vsel %vm1392_vm3, %v3273_v35, 0.0  ;;  %v1500_v35 = vsub.f32 %v3974_v37, %v4231_v26 }
 0x424   : > { %3278 = vpow2.f32 %v1930_v22  ;;  %v4257_v22 = vpop.xlane.xlu0 %1436 }
 0x425   : > { %v1543_v39 = vmul.f32 1.442695, %v1500_v35 }
 0x427   : > { %3280 = vpow2.f32 %v1543_v39 }
 0x428   : > { %v4261_v39 = vpop.xlane.xlu0 %1821 }
 0x42e   : > { %v3279_v28 = vpop.eup %3278 }
 0x431   : > { %v3281_v16 = vpop.eup %3280 }
 0x43f   : > { %1613 = vadd.xlane.f32.xlu1 %v1612_v43  ;;  %v4251_v43 = vpop.xlane.xlu1 %1433 }
 0x440   : > { %5039 = vst [vmem:[#allocation37_spill] sm:$0xff] %v4251_v43 }
 0x442   : > { %1616 = vadd.xlane.f32.xlu0 %v1615_v62  ;;  %v1545_v62 = vmul.f32 1.442695, %v1501_v24  ;;  %v1888_v24 = vsub.f32 %v4029_v9, %v4261_v39 }
 0x443   : > { %v4253_v2 = vpop.xlane.xlu1 %1818 }
 0x444   : > { %3282 = vpow2.f32 %v1545_v62  ;;  %5040 = vst [vmem:[#allocation38_spill] sm:$0xff] %v4253_v2  ;;  %v1934_v62 = vmul.f32 1.442695, %v1888_v24 }
 0x44e   : > { %v3283_v37 = vpop.eup %3282 }
 0x44f   : > { %v1621_v26 = vsel %vm1392_vm3, %v3283_v37, 0.0  ;;  %v1503_v37 = vsub.f32 %v4029_v9, %v4257_v22 }
 0x450   : > { %2024 = vrot.lane.b32.xlu1 %v3277_v56, %s3576_s30  ;;  %v1887_v56 = vsub.f32 %v4000_v17, %v4253_v2 }
 0x452   : > { %v1932_v35 = vmul.f32 1.442695, %v1887_v56 }
 0x454   : > { %3284 = vpow2.f32 %v1932_v35 }
 0x455   : > { %3286 = vpow2.f32 %v1934_v62  ;;  %v4277_v62 = vpop.xlane.xlu0 %1442 }
 0x456   : > { %5043 = vst [vmem:[#allocation41_spill] sm:$0xff] %v4277_v62 }
 0x458   : > { %2026 = vrot.lane.b32.xlu0 %v3279_v28, %s3576_s30  ;;  %v1618_v28 = vsel %vm1392_vm3, %v3281_v16, 0.0  ;;  %v1502_v16 = vsub.f32 %v4000_v17, %v4251_v43 }
 0x45a   : > { %v1547_v56 = vmul.f32 1.442695, %v1502_v16 }
 0x45c   : > { %3288 = vpow2.f32 %v1547_v56  ;;  %v4281_v56 = vpop.xlane.xlu0 %1827 }
 0x45d   : > { %5044 = vst [vmem:[#allocation42_spill] sm:$0xff] %v4281_v56 }
 0x45e   : > { %v3285_v14 = vpop.eup %3284 }
 0x45f   : > { %v3287_v2 = vpop.eup %3286 }
 0x466   : > { %v3289_v24 = vpop.eup %3288 }
 0x474   : > { %1619 = vadd.xlane.f32.xlu1 %v1618_v28  ;;  %v4271_v28 = vpop.xlane.xlu1 %1439 }
 0x475   : > { %5041 = vst [vmem:[#allocation39_spill] sm:$0xff] %v4271_v28 }
 0x477   : > { %1622 = vadd.xlane.f32.xlu0 %v1621_v26  ;;  %v1549_v26 = vmul.f32 1.442695, %v1503_v37  ;;  %v1890_v37 = vsub.f32 %v3969_v34, %v4281_v56 }
 0x478   : > { %v4273_v35 = vpop.xlane.xlu1 %1824 }
 0x479   : > { %3290 = vpow2.f32 %v1549_v26  ;;  %5042 = vst [vmem:[#allocation40_spill] sm:$0xff] %v4273_v35  ;;  %v1938_v26 = vmul.f32 1.442695, %v1890_v37 }
 0x483   : > { %v3291_v17 = vpop.eup %3290 }
 0x484   : > { %v1627_v43 = vsel %vm1392_vm3, %v3291_v17, 0.0  ;;  %v1505_v17 = vsub.f32 %v3969_v34, %v4277_v62 }
 0x485   : > { %2028 = vrot.lane.b32.xlu1 %v3285_v14, %s3576_s30  ;;  %v1889_v14 = vsub.f32 %v4026_v8, %v4273_v35 }
 0x487   : > { %v1936_v16 = vmul.f32 1.442695, %v1889_v14 }
 0x489   : > { %3292 = vpow2.f32 %v1936_v16 }
 0x48a   : > { %3294 = vpow2.f32 %v1938_v26  ;;  %v4297_v26 = vpop.xlane.xlu0 %1448 }
 0x48b   : > { %5047 = vst [vmem:[#allocation45_spill] sm:$0xff] %v4297_v26 }
 0x48d   : > { %2030 = vrot.lane.b32.xlu0 %v3287_v2, %s3576_s30  ;;  %v1624_v2 = vsel %vm1392_vm3, %v3289_v24, 0.0  ;;  %v1504_v24 = vsub.f32 %v4026_v8, %v4271_v28 }
 0x48f   : > { %v1551_v14 = vmul.f32 1.442695, %v1504_v24 }
 0x491   : > { %3296 = vpow2.f32 %v1551_v14  ;;  %v4301_v14 = vpop.xlane.xlu0 %1833 }
 0x492   : > { %5048 = vst [vmem:[#allocation46_spill] sm:$0xff] %v4301_v14 }
 0x493   : > { %v3293_v52 = vpop.eup %3292 }
 0x494   : > { %v3295_v35 = vpop.eup %3294 }
 0x49b   : > { %v3297_v37 = vpop.eup %3296 }
 0x4a9   : > { %1625 = vadd.xlane.f32.xlu1 %v1624_v2  ;;  %v4291_v2 = vpop.xlane.xlu1 %1445 }
 0x4aa   : > { %5045 = vst [vmem:[#allocation43_spill] sm:$0xff] %v4291_v2 }
 0x4ac   : > { %1628 = vadd.xlane.f32.xlu0 %v1627_v43  ;;  %v1553_v43 = vmul.f32 1.442695, %v1505_v17  ;;  %v1892_v17 = vsub.f32 %v3985_v42, %v4301_v14 }
 0x4ad   : > { %v4293_v16 = vpop.xlane.xlu1 %1830 }
 0x4ae   : > { %3298 = vpow2.f32 %v1553_v43  ;;  %5046 = vst [vmem:[#allocation44_spill] sm:$0xff] %v4293_v16  ;;  %v1942_v43 = vmul.f32 1.442695, %v1892_v17 }
 0x4b8   : > { %v3299_v8 = vpop.eup %3298 }
 0x4b9   : > { %v1633_v28 = vsel %vm1392_vm3, %v3299_v8, 0.0  ;;  %v1507_v8 = vsub.f32 %v3985_v42, %v4297_v26 }
 0x4ba   : > { %2032 = vrot.lane.b32.xlu1 %v3293_v52, %s3576_s30  ;;  %v1891_v52 = vsub.f32 %v3966_v32, %v4293_v16 }
 0x4bc   : > { %v1940_v24 = vmul.f32 1.442695, %v1891_v52 }
 0x4be   : > { %3300 = vpow2.f32 %v1940_v24 }
 0x4bf   : > { %3302 = vpow2.f32 %v1942_v43  ;;  %v4317_v43 = vpop.xlane.xlu0 %1454 }
 0x4c0   : > { %5051 = vst [vmem:[#allocation49_spill] sm:$0xff] %v4317_v43 }
 0x4c2   : > { %2034 = vrot.lane.b32.xlu0 %v3295_v35, %s3576_s30  ;;  %v1630_v35 = vsel %vm1392_vm3, %v3297_v37, 0.0  ;;  %v1506_v37 = vsub.f32 %v3966_v32, %v4291_v2 }
 0x4c4   : > { %v1555_v52 = vmul.f32 1.442695, %v1506_v37 }
 0x4c6   : > { %3304 = vpow2.f32 %v1555_v52  ;;  %v4321_v52 = vpop.xlane.xlu0 %1839 }
 0x4c7   : > { %5052 = vst [vmem:[#allocation50_spill] sm:$0xff] %v4321_v52 }
 0x4c8   : > { %v3301_v45 = vpop.eup %3300 }
 0x4c9   : > { %v3303_v16 = vpop.eup %3302 }
 0x4d0   : > { %v3305_v17 = vpop.eup %3304 }
 0x4de   : > { %1631 = vadd.xlane.f32.xlu1 %v1630_v35  ;;  %v4311_v35 = vpop.xlane.xlu1 %1451 }
 0x4df   : > { %5049 = vst [vmem:[#allocation47_spill] sm:$0xff] %v4311_v35 }
 0x4e1   : > { %1634 = vadd.xlane.f32.xlu0 %v1633_v28  ;;  %v1557_v28 = vmul.f32 1.442695, %v1507_v8  ;;  %v1894_v8 = vsub.f32 %v3995_v49, %v4321_v52 }
 0x4e2   : > { %v4313_v24 = vpop.xlane.xlu1 %1836 }
 0x4e3   : > { %3306 = vpow2.f32 %v1557_v28  ;;  %5050 = vst [vmem:[#allocation48_spill] sm:$0xff] %v4313_v24  ;;  %v1946_v28 = vmul.f32 1.442695, %v1894_v8 }
 0x4ed   : > { %v3307_v32 = vpop.eup %3306 }
 0x4ee   : > { %v1639_v2 = vsel %vm1392_vm3, %v3307_v32, 0.0  ;;  %v1509_v32 = vsub.f32 %v3995_v49, %v4317_v43 }
 0x4ef   : > { %2036 = vrot.lane.b32.xlu1 %v3301_v45, %s3576_s30  ;;  %v1893_v45 = vsub.f32 %v3982_v40, %v4313_v24 }
 0x4f1   : > { %v1944_v37 = vmul.f32 1.442695, %v1893_v45 }
 0x4f3   : > { %3308 = vpow2.f32 %v1944_v37 }
 0x4f4   : > { %3310 = vpow2.f32 %v1946_v28  ;;  %v4337_v28 = vpop.xlane.xlu0 %1460 }
 0x4f5   : > { %5055 = vst [vmem:[#allocation53_spill] sm:$0xff] %v4337_v28 }
 0x4f7   : > { %2038 = vrot.lane.b32.xlu0 %v3303_v16, %s3576_s30  ;;  %v1636_v16 = vsel %vm1392_vm3, %v3305_v17, 0.0  ;;  %v1508_v17 = vsub.f32 %v3982_v40, %v4311_v35 }
 0x4f9   : > { %v1559_v45 = vmul.f32 1.442695, %v1508_v17 }
 0x4fb   : > { %3312 = vpow2.f32 %v1559_v45  ;;  %v4341_v45 = vpop.xlane.xlu0 %1845 }
 0x4fc   : > { %5056 = vst [vmem:[#allocation54_spill] sm:$0xff] %v4341_v45 }
 0x4fd   : > { %v3309_v4 = vpop.eup %3308 }
 0x4fe   : > { %v3311_v24 = vpop.eup %3310 }
 0x505   : > { %v3313_v8 = vpop.eup %3312 }
 0x513   : > { %1637 = vadd.xlane.f32.xlu1 %v1636_v16  ;;  %v4331_v16 = vpop.xlane.xlu1 %1457 }
 0x514   : > { %5053 = vst [vmem:[#allocation51_spill] sm:$0xff] %v4331_v16 }
 0x516   : > { %1640 = vadd.xlane.f32.xlu0 %v1639_v2  ;;  %v1561_v2 = vmul.f32 1.442695, %v1509_v32  ;;  %v1896_v32 = vsub.f32 %v4011_v60, %v4341_v45 }
 0x517   : > { %v4333_v37 = vpop.xlane.xlu1 %1842 }
 0x518   : > { %3314 = vpow2.f32 %v1561_v2  ;;  %5054 = vst [vmem:[#allocation52_spill] sm:$0xff] %v4333_v37  ;;  %v1950_v2 = vmul.f32 1.442695, %v1896_v32 }
 0x522   : > { %v3315_v40 = vpop.eup %3314 }
 0x523   : > { %v1645_v35 = vsel %vm1392_vm3, %v3315_v40, 0.0  ;;  %v1511_v40 = vsub.f32 %v4011_v60, %v4337_v28 }
 0x524   : > { %2040 = vrot.lane.b32.xlu1 %v3309_v4, %s3576_s30  ;;  %v1895_v4 = vsub.f32 %v3992_v46, %v4333_v37 }
 0x526   : > { %v1948_v17 = vmul.f32 1.442695, %v1895_v4 }
 0x528   : > { %3316 = vpow2.f32 %v1948_v17 }
 0x529   : > { %3318 = vpow2.f32 %v1950_v2  ;;  %v4357_v2 = vpop.xlane.xlu0 %1466 }
 0x52a   : > { %5059 = vst [vmem:[#allocation57_spill] sm:$0xff] %v4357_v2 }
 0x52c   : > { %2042 = vrot.lane.b32.xlu0 %v3311_v24, %s3576_s30  ;;  %v1642_v24 = vsel %vm1392_vm3, %v3313_v8, 0.0  ;;  %v1510_v8 = vsub.f32 %v3992_v46, %v4331_v16 }
 0x52e   : > { %v1563_v4 = vmul.f32 1.442695, %v1510_v8 }
 0x530   : > { %3320 = vpow2.f32 %v1563_v4  ;;  %v4361_v4 = vpop.xlane.xlu0 %1851 }
 0x531   : > { %5060 = vst [vmem:[#allocation58_spill] sm:$0xff] %v4361_v4 }
 0x532   : > { %v3317_v61 = vpop.eup %3316 }
 0x533   : > { %v3319_v37 = vpop.eup %3318 }
 0x53a   : > { %v3321_v32 = vpop.eup %3320 }
 0x548   : > { %1643 = vadd.xlane.f32.xlu1 %v1642_v24  ;;  %v4351_v24 = vpop.xlane.xlu1 %1463 }
 0x549   : > { %5057 = vst [vmem:[#allocation55_spill] sm:$0xff] %v4351_v24 }
 0x54b   : > { %1646 = vadd.xlane.f32.xlu0 %v1645_v35  ;;  %v1565_v35 = vmul.f32 1.442695, %v1511_v40  ;;  %v1898_v40 = vsub.f32 %v4021_v3, %v4361_v4 }
 0x54c   : > { %v4353_v17 = vpop.xlane.xlu1 %1848 }
 0x54d   : > { %3322 = vpow2.f32 %v1565_v35  ;;  %5058 = vst [vmem:[#allocation56_spill] sm:$0xff] %v4353_v17  ;;  %v1954_v35 = vmul.f32 1.442695, %v1898_v40 }
 0x557   : > { %v3323_v46 = vpop.eup %3322 }
 0x558   : > { %v1651_v16 = vsel %vm1392_vm3, %v3323_v46, 0.0  ;;  %v1513_v46 = vsub.f32 %v4021_v3, %v4357_v2 }
 0x559   : > { %2044 = vrot.lane.b32.xlu1 %v3317_v61, %s3576_s30  ;;  %v1897_v61 = vsub.f32 %v4008_v57, %v4353_v17 }
 0x55b   : > { %v1952_v8 = vmul.f32 1.442695, %v1897_v61 }
 0x55d   : > { %3324 = vpow2.f32 %v1952_v8 }
 0x55e   : > { %3326 = vpow2.f32 %v1954_v35  ;;  %v4377_v35 = vpop.xlane.xlu0 %1472 }
 0x55f   : > { %5063 = vst [vmem:[#allocation61_spill] sm:$0xff] %v4377_v35 }
 0x561   : > { %2046 = vrot.lane.b32.xlu0 %v3319_v37, %s3576_s30  ;;  %v1648_v37 = vsel %vm1392_vm3, %v3321_v32, 0.0  ;;  %v1512_v32 = vsub.f32 %v4008_v57, %v4351_v24 }
 0x563   : > { %v1567_v61 = vmul.f32 1.442695, %v1512_v32 }
 0x565   : > { %3328 = vpow2.f32 %v1567_v61  ;;  %v4381_v61 = vpop.xlane.xlu0 %1857 }
 0x566   : > { %5064 = vst [vmem:[#allocation62_spill] sm:$0xff] %v4381_v61 }
 0x567   : > { %v3325_v50 = vpop.eup %3324 }
 0x568   : > { %v3327_v17 = vpop.eup %3326 }
 0x56f   : > { %v3329_v40 = vpop.eup %3328 }
 0x57d   : > { %1649 = vadd.xlane.f32.xlu1 %v1648_v37  ;;  %v4371_v37 = vpop.xlane.xlu1 %1469 }
 0x57e   : > { %5061 = vst [vmem:[#allocation59_spill] sm:$0xff] %v4371_v37 }
 0x580   : > { %1652 = vadd.xlane.f32.xlu0 %v1651_v16  ;;  %v1569_v16 = vmul.f32 1.442695, %v1513_v46  ;;  %v1900_v46 = vsub.f32 %v4037_v13, %v4381_v61 }
 0x581   : > { %v4373_v8 = vpop.xlane.xlu1 %1854 }
 0x582   : > { %3330 = vpow2.f32 %v1569_v16  ;;  %5062 = vst [vmem:[#allocation60_spill] sm:$0xff] %v4373_v8  ;;  %v1958_v16 = vmul.f32 1.442695, %v1900_v46 }
 0x58c   : > { %v3331_v57 = vpop.eup %3330 }
 0x58d   : > { %v1657_v24 = vsel %vm1392_vm3, %v3331_v57, 0.0  ;;  %v1515_v57 = vsub.f32 %v4037_v13, %v4377_v35 }
 0x58e   : > { %2048 = vrot.lane.b32.xlu1 %v3325_v50, %s3576_s30  ;;  %v1899_v50 = vsub.f32 %v4018_v1, %v4373_v8 }
 0x590   : > { %v1956_v32 = vmul.f32 1.442695, %v1899_v50 }
 0x592   : > { %3332 = vpow2.f32 %v1956_v32 }
 0x593   : > { %3334 = vpow2.f32 %v1958_v16  ;;  %v4397_v16 = vpop.xlane.xlu0 %1478 }
 0x594   : > { %5067 = vst [vmem:[#allocation65_spill] sm:$0xff] %v4397_v16 }
 0x596   : > { %2050 = vrot.lane.b32.xlu0 %v3327_v17, %s3576_s30  ;;  %v1654_v17 = vsel %vm1392_vm3, %v3329_v40, 0.0  ;;  %v1514_v40 = vsub.f32 %v4018_v1, %v4371_v37 }
 0x598   : > { %v1571_v50 = vmul.f32 1.442695, %v1514_v40 }
 0x59a   : > { %3336 = vpow2.f32 %v1571_v50  ;;  %v4401_v50 = vpop.xlane.xlu0 %1863 }
 0x59b   : > { %5068 = vst [vmem:[#allocation66_spill] sm:$0xff] %v4401_v50 }
 0x59c   : > { %v3333_v3 = vpop.eup %3332 }
 0x59d   : > { %v3335_v8 = vpop.eup %3334 }
 0x5a4   : > { %v3337_v46 = vpop.eup %3336 }
 0x5b2   : > { %1655 = vadd.xlane.f32.xlu1 %v1654_v17  ;;  %v4391_v17 = vpop.xlane.xlu1 %1475 }
 0x5b3   : > { %5065 = vst [vmem:[#allocation63_spill] sm:$0xff] %v4391_v17 }
 0x5b5   : > { %1658 = vadd.xlane.f32.xlu0 %v1657_v24  ;;  %v1573_v24 = vmul.f32 1.442695, %v1515_v57  ;;  %v1902_v57 = vsub.f32 %v4047_v21, %v4401_v50 }
 0x5b6   : > { %v4393_v32 = vpop.xlane.xlu1 %1860 }
 0x5b7   : > { %3338 = vpow2.f32 %v1573_v24  ;;  %5066 = vst [vmem:[#allocation64_spill] sm:$0xff] %v4393_v32  ;;  %v1962_v24 = vmul.f32 1.442695, %v1902_v57 }
 0x5c1   : > { %v3339_v1 = vpop.eup %3338 }
 0x5c2   : > { %v1663_v37 = vsel %vm1392_vm3, %v3339_v1, 0.0  ;;  %v1516_v1 = vsub.f32 %v4034_v11, %v4391_v17 }
 0x5c3   : > { %2052 = vrot.lane.b32.xlu1 %v3333_v3, %s3576_s30  ;;  %v1901_v3 = vsub.f32 %v4034_v11, %v4393_v32  ;;  %v4406_v32 = vpop.xlane.xlu0 %1484 }
 0x5c4   : > { %5069 = vst [vmem:[#allocation67_spill] sm:$0xff] %v4406_v32  ;;  %v1519_v28 = vsub.f32 %v4057_v29, %v4406_v32 }
 0x5c5   : > { %v1960_v40 = vmul.f32 1.442695, %v1901_v3 }
 0x5c6   : > { %v1581_v52 = vmul.f32 1.442695, %v1519_v28 }
 0x5c7   : > { %3340 = vpow2.f32 %v1960_v40  ;;  %v4409_v3 = vpop.xlane.xlu0 %1869  ;;  %v1517_v40 = vsub.f32 %v4047_v21, %v4397_v16 }
 0x5c8   : > { %3342 = vpow2.f32 %v1962_v24  ;;  %5070 = vst [vmem:[#allocation68_spill] sm:$0xff] %v4409_v3  ;;  %v4419_v24 = vpop.xlane.xlu1 %1481  ;;  %v1904_v16 = vsub.f32 %v4057_v29, %v4409_v3 }
 0x5c9   : > { %5071 = vst [vmem:[#allocation69_spill] sm:$0xff] %v4419_v24  ;;  %v1518_v30 = vsub.f32 %v4044_v20, %v4419_v24 }
 0x5cb   : > { %2054 = vrot.lane.b32.xlu0 %v3335_v8, %s3576_s30  ;;  %v1660_v8 = vsel %vm1392_vm3, %v3337_v46, 0.0  ;;  %v1579_v45 = vmul.f32 1.442695, %v1518_v30 }
 0x5d1   : > { %v3341_v13 = vpop.eup %3340 }
 0x5d2   : > { %v3343_v46 = vpop.eup %3342 }
 0x5e7   : > { %1661 = vadd.xlane.f32.xlu1 %v1660_v8  ;;  %v1575_v8 = vmul.f32 1.442695, %v1516_v1 }
 0x5e9   : > { %3344 = vpow2.f32 %v1575_v8 }
 0x5ea   : > { %1664 = vadd.xlane.f32.xlu0 %v1663_v37  ;;  %v4413_v37 = vpop.permute.xlu0 %2002 }
 0x5eb   : > { %v2098_v56 = vsel %vm1392_vm3, %v4413_v37, 0.0 }
 0x5ee   : > { %v4417_v57 = vpop.xlane.xlu0 %1586 }
 0x5f2   : > { %v4421_v50 = vpop.xlane.xlu0 %1592 }
 0x5f3   : > { %v3345_v61 = vpop.eup %3344 }
 0x5f4   : > { %v1666_v11 = vsel %vm1392_vm3, %v3345_v61, 0.0 }
 0x5f6   : > { %v4425_v35 = vpop.permute.xlu0 %2010 }
 0x5f7   : > { %v2110_v37 = vsel %vm1392_vm3, %v4425_v35, 0.0 }
 0x5f8   : > { %2056 = vrot.lane.b32.xlu1 %v3341_v13, %s3576_s30  ;;  %v1577_v13 = vmul.f32 1.442695, %v1517_v40 }
 0x5fa   : > { %3346 = vpow2.f32 %v1577_v13  ;;  %v4430_v21 = vpop.xlane.xlu0 %1598 }
 0x5fe   : > { %v2015_v4 = vpop.permute.xlu0 %2014 }
 0x600   : > { %2058 = vrot.lane.b32.xlu0 %v3343_v46, %s3576_s30  ;;  %v4423_v46 = vpop.xlane.xlu1 %1866 }
 0x601   : > { %5072 = vst [vmem:[#allocation70_spill] sm:$0xff] %v4423_v46  ;;  %v1903_v1 = vsub.f32 %v4044_v20, %v4423_v46  ;;  %v1966_v46 = vmul.f32 1.442695, %v1904_v16 }
 0x602   : > { %v4439_v2 = vpop.xlane.xlu0 %1604 }
 0x603   : > { %v1964_v8 = vmul.f32 1.442695, %v1903_v1 }
 0x604   : > { %v3347_v17 = vpop.eup %3346  ;;  %v4432_v40 = vpop.xlane.xlu1 %1487 }
 0x605   : > { %5073 = vst [vmem:[#allocation71_spill] sm:$0xff] %v4432_v40  ;;  %v1669_v13 = vsel %vm1392_vm3, %v3347_v17, 0.0  ;;  %3348 = vpow2.f32 %v1964_v8 }
 0x606   : > { %3350 = vpow2.f32 %v1966_v46  ;;  %v2019_v60 = vpop.permute.xlu0 %2018 }
 0x607   : > { %3352 = vpow2.f32 %v1579_v45 }
 0x608   : > { %v4437_v53 = vpop.xlane.xlu1 %1872  ;;  %3354 = vpow2.f32 %v1581_v52 }
 0x609   : > { %5074 = vst [vmem:[#allocation72_spill] sm:$0xff] %v4437_v53  ;;  %v1905_v30 = vsub.f32 %v4054_v27, %v4437_v53 }
 0x60a   : > { %v4446_v17 = vpop.xlane.xlu0 %1610 }
 0x60b   : > { %v1968_v28 = vmul.f32 1.442695, %v1905_v30 }
 0x60c   : > { %v4441_v61 = vpop.permute.xlu1 %2004 }
 0x60d   : > { %3356 = vpow2.f32 %v1968_v28 }
 0x60e   : > { %v2023_v16 = vpop.permute.xlu0 %2022 }
 0x60f   : > { %v2128_v35 = vsel %vm1392_vm3, %v2023_v16, 0.0 }
 0x610   : > { %v4443_v1 = vpop.xlane.xlu1 %1589 }
 0x612   : > { %v4453_v31 = vpop.xlane.xlu0 %1616 }
 0x614   : > { %v2009_v8 = vpop.permute.xlu1 %2008 }
 0x618   : > { %v4448_v3 = vpop.xlane.xlu1 %1595 }
 0x61c   : > { %1667 = vadd.xlane.f32.xlu1 %v1666_v11  ;;  %v3349_v11 = vpop.eup %3348  ;;  %v2007_v46 = vpop.permute.xlu1 %2006 }
 0x61d   : > { %v2104_v30 = vsel %vm1392_vm3, %v2007_v46, 0.0  ;;  %v2122_v46 = vsel %vm1392_vm3, %v2019_v60, 0.0 }
 0x61f   : > { %1670 = vadd.xlane.f32.xlu0 %v1669_v13  ;;  %v3351_v13 = vpop.eup %3350 }
 0x620   : > { %v4457_v49 = vpop.permute.xlu1 %2012  ;;  %v3353_v20 = vpop.eup %3352 }
 0x621   : > { %v1672_v32 = vsel %vm1392_vm3, %v3353_v20, 0.0  ;;  %v3355_v45 = vpop.eup %3354  ;;  %v2107_v20 = vsel %vm1392_vm3, %v2009_v8, 0.0  ;;  %v2116_v8 = vsel %vm1392_vm3, %v2015_v4, 0.0 }
 0x622   : > { %v1675_v26 = vsel %vm1392_vm3, %v3355_v45, 0.0 }
 0x624   : > { %v4461_v42 = vpop.xlane.xlu1 %1601 }
 0x628   : > { %v4463_v14 = vpop.permute.xlu1 %2016 }
 0x62c   : > { %v4469_v29 = vpop.xlane.xlu1 %1607 }
 0x62d   : > { %2060 = vrot.lane.b32.xlu1 %v3349_v11, %s3576_s30  ;;  %v2027_v11 = vpop.permute.xlu0 %2026  ;;  %5075 = vst [vmem:[#allocation73_spill] sm:$0xff] %v4469_v29 }
 0x62e   : > { %v2134_v4 = vsel %vm1392_vm3, %v2027_v11, 0.0 }
 0x630   : > { %v4473_v52 = vpop.permute.xlu1 %2020 }
 0x631   : > { %v4459_v43 = vpop.xlane.xlu0 %1622 }
 0x634   : > { %v4479_v62 = vpop.xlane.xlu1 %1613 }
 0x635   : > { %2062 = vrot.lane.b32.xlu0 %v3351_v13, %s3576_s30  ;;  %v2031_v13 = vpop.permute.xlu0 %2030  ;;  %5076 = vst [vmem:[#allocation74_spill] sm:$0xff] %v4479_v62 }
 0x636   : > { %v2140_v60 = vsel %vm1392_vm3, %v2031_v13, 0.0 }
 0x638   : > { %v4483_v45 = vpop.permute.xlu1 %2024 }
 0x639   : > { %v4467_v24 = vpop.xlane.xlu0 %1628 }
 0x63d   : > { %v2035_v34 = vpop.permute.xlu0 %2034 }
 0x641   : > { %v4477_v53 = vpop.xlane.xlu0 %1634 }
 0x651   : > { %1673 = vadd.xlane.f32.xlu1 %v1672_v32  ;;  %v2039_v32 = vpop.permute.xlu0 %2038 }
 0x654   : > { %1676 = vadd.xlane.f32.xlu0 %v1675_v26  ;;  %v3357_v26 = vpop.eup %3356 }
 0x655   : > { %v4486_v28 = vpop.xlane.xlu0 %1640 }
 0x658   : > { %2099 = vadd.xlane.f32.xlu0 %v2098_v56  ;;  %v4490_v56 = vpop.xlane.xlu1 %1619 }
 0x659   : > { %5077 = vst [vmem:[#allocation75_spill] sm:$0xff] %v4490_v56 }
 0x65c   : > { %2108 = vadd.xlane.f32.xlu0 %v2107_v20  ;;  %v2043_v20 = vpop.permute.xlu0 %2042  ;;  %v2029_v62 = vpop.permute.xlu1 %2028 }
 0x660   : > { %2105 = vadd.xlane.f32.xlu0 %v2104_v30  ;;  %v4494_v29 = vpop.xlane.xlu0 %1646  ;;  %v4496_v30 = vpop.xlane.xlu1 %1625 }
 0x661   : > { %5078 = vst [vmem:[#allocation76_spill] sm:$0xff] %v4496_v30  ;;  %v2146_v30 = vsel %vm1392_vm3, %v2035_v34, 0.0 }
 0x662   : > { %2064 = vrot.lane.b32.xlu1 %v3357_v26, %s3576_s30  ;;  %v1520_v26 = vsub.f32 %v4054_v27, %v4432_v40 }
 0x664   : > { %2111 = vadd.xlane.f32.xlu0 %v2110_v37  ;;  %v2047_v56 = vpop.permute.xlu0 %2046  ;;  %v1583_v37 = vmul.f32 1.442695, %v1520_v26  ;;  %v2033_v9 = vpop.permute.xlu1 %2032 }
 0x665   : > { %v2164_v34 = vsel %vm1392_vm3, %v2047_v56, 0.0  ;;  %v2119_v56 = vsel %vm1392_vm3, %v4463_v14, 0.0  ;;  %v2137_v14 = vsel %vm1392_vm3, %v2029_v62, 0.0 }
 0x666   : > { %3358 = vpow2.f32 %v1583_v37  ;;  %v2158_v37 = vsel %vm1392_vm3, %v2043_v20, 0.0  ;;  %v2113_v20 = vsel %vm1392_vm3, %v4457_v49, 0.0  ;;  %v2131_v49 = vsel %vm1392_vm3, %v4483_v45, 0.0 }
 0x667   : > { %3360 = vlog2.f32 %v4417_v57 }
 0x668   : > { %2117 = vadd.xlane.f32.xlu0 %v2116_v8  ;;  %v4502_v8 = vpop.xlane.xlu0 %1652  ;;  %3362 = vlog2.f32 %v4448_v3 }
 0x66c   : > { %2123 = vadd.xlane.f32.xlu0 %v2122_v46  ;;  %v4505_v46 = vpop.xlane.xlu1 %1631  ;;  %v2051_v27 = vpop.permute.xlu0 %2050 }
 0x670   : > { %2129 = vadd.xlane.f32.xlu0 %v2128_v35  ;;  %v2037_v16 = vpop.permute.xlu1 %2036  ;;  %v2152_v35 = vsel %vm1392_vm3, %v2039_v32, 0.0  ;;  %v4509_v26 = vpop.xlane.xlu0 %1658 }
 0x671   : > { %v3359_v11 = vpop.eup %3358 }
 0x672   : > { %v1678_v13 = vsel %vm1392_vm3, %v3359_v11, 0.0 }
 0x674   : > { %2135 = vadd.xlane.f32.xlu0 %v2134_v4  ;;  %v4511_v4 = vpop.xlane.xlu1 %1637 }
 0x675   : > { %5079 = vst [vmem:[#allocation77_spill] sm:$0xff] %v4511_v4  ;;  %v2170_v4 = vsel %vm1392_vm3, %v2051_v27, 0.0 }
 0x678   : > { %2141 = vadd.xlane.f32.xlu0 %v2140_v60  ;;  %v2055_v60 = vpop.permute.xlu0 %2054  ;;  %v2041_v40 = vpop.permute.xlu1 %2040 }
 0x679   : > { %v2176_v11 = vsel %vm1392_vm3, %v2055_v60, 0.0 }
 0x67c   : > { %2147 = vadd.xlane.f32.xlu0 %v2146_v30  ;;  %v2101_v30 = vsel %vm1392_vm3, %v4441_v61, 0.0  ;;  %v4518_v32 = vpop.xlane.xlu0 %1664 }
 0x680   : > { %2153 = vadd.xlane.f32.xlu0 %v2152_v35  ;;  %v4520_v35 = vpop.xlane.xlu1 %1643 }
 0x684   : > { %2159 = vadd.xlane.f32.xlu0 %v2158_v37  ;;  %v2059_v37 = vpop.permute.xlu0 %2058  ;;  %v2045_v61 = vpop.permute.xlu1 %2044 }
 0x685   : > { %v2161_v45 = vsel %vm1392_vm3, %v2045_v61, 0.0 }
 0x686   : > { %1679 = vadd.xlane.f32.xlu1 %v1678_v13  ;;  %v2182_v13 = vsel %vm1392_vm3, %v2059_v37, 0.0 }
 0x688   : > { %2165 = vadd.xlane.f32.xlu0 %v2164_v34  ;;  %v2125_v34 = vsel %vm1392_vm3, %v4473_v52, 0.0  ;;  %v4531_v27 = vpop.xlane.xlu1 %1649 }
 0x68a   : > { %2102 = vadd.xlane.f32.xlu1 %v2101_v30  ;;  %v2143_v30 = vsel %vm1392_vm3, %v2033_v9, 0.0 }
 0x68c   : > { %2171 = vadd.xlane.f32.xlu0 %v2170_v4  ;;  %v2049_v4 = vpop.permute.xlu1 %2048 }
 0x68e   : > { %2114 = vadd.xlane.f32.xlu1 %v2113_v20  ;;  %v2149_v20 = vsel %vm1392_vm3, %v2037_v16, 0.0 }
 0x690   : > { %2177 = vadd.xlane.f32.xlu0 %v2176_v11  ;;  %v4536_v60 = vpop.xlane.xlu1 %1655  ;;  %v2155_v11 = vsel %vm1392_vm3, %v2041_v40, 0.0 }
 0x692   : > { %2120 = vadd.xlane.f32.xlu1 %v2119_v56 }
 0x694   : > { %2183 = vadd.xlane.f32.xlu0 %v2182_v13  ;;  %v2053_v52 = vpop.permute.xlu1 %2052  ;;  %v2167_v13 = vsel %vm1392_vm3, %v2049_v4, 0.0 }
 0x695   : > { %v2173_v40 = vsel %vm1392_vm3, %v2053_v52, 0.0 }
 0x696   : > { %2126 = vadd.xlane.f32.xlu1 %v2125_v34 }
 0x698   : > { %v4541_v56 = vpop.xlane.xlu1 %1661 }
 0x69a   : > { %2132 = vadd.xlane.f32.xlu1 %v2131_v49 }
 0x69c   : > { %v2057_v62 = vpop.permute.xlu1 %2056 }
 0x69d   : > { %v2179_v49 = vsel %vm1392_vm3, %v2057_v62, 0.0  ;;  %v3361_v62 = vpop.eup %3360 }
 0x69e   : > { %2138 = vadd.xlane.f32.xlu1 %v2137_v14 }
 0x6a2   : > { %2144 = vadd.xlane.f32.xlu1 %v2143_v30 }
 0x6a6   : > { %2150 = vadd.xlane.f32.xlu1 %v2149_v20 }
 0x6a9   : > { %v4548_v16 = vpop.xlane.xlu1 %1667 }
 0x6aa   : > { %2156 = vadd.xlane.f32.xlu1 %v2155_v11 }
 0x6ac   : > { %v4544_v37 = vpop.xlane.xlu0 %1670 }
 0x6ad   : > { %v2061_v14 = vpop.permute.xlu1 %2060 }
 0x6ae   : > { %2162 = vadd.xlane.f32.xlu1 %v2161_v45  ;;  %v2185_v61 = vsel %vm1392_vm3, %v2061_v14, 0.0 }
 0x6b0   : > { %v2063_v34 = vpop.permute.xlu0 %2062 }
 0x6b1   : > { %v2188_v9 = vsel %vm1392_vm3, %v2063_v34, 0.0  ;;  %v3363_v34 = vpop.eup %3362 }
 0x6b2   : > { %2168 = vadd.xlane.f32.xlu1 %v2167_v13  ;;  %2189 = vadd.xlane.f32.xlu0 %v2188_v9  ;;  %v1682_v9 = vmul.f32 0.6931472, %v3361_v62  ;;  %v1688_v14 = vmul.f32 0.6931472, %v3363_v34 }
 0x6b6   : > { %2174 = vadd.xlane.f32.xlu1 %v2173_v40 }
 0x6ba   : > { %2180 = vadd.xlane.f32.xlu1 %v2179_v49 }
 0x6be   : > { %2186 = vadd.xlane.f32.xlu1 %v2185_v61 }
 0x6de   : > { %v4553_v30 = vpop.xlane.xlu1 %1673 }
 0x6e1   : > { %v4555_v4 = vpop.xlane.xlu0 %1676 }
 0x6e2   : > { %v2065_v20 = vpop.permute.xlu1 %2064 }
 0x6e3   : > { %v2191_v11 = vsel %vm1392_vm3, %v2065_v20, 0.0 }
 0x6e4   : > { %2192 = vadd.xlane.f32.xlu1 %v2191_v11 }
 0x6e5   : > { %v2100_v52 = vpop.xlane.xlu0 %2099 }
 0x6e6   : > { %3364 = vlog2.f32 %v2100_v52 }
 0x6e7   : > { %3366 = vlog2.f32 %v4421_v50  ;;  %v1745_v50 = vadd.f32 %v1682_v9, %v4129_v51 }
 0x6e9   : > { %v2109_v45 = vpop.xlane.xlu0 %2108 }
 0x6ea   : > { %3368 = vlog2.f32 %v2109_v45 }
 0x6eb   : > { %3370 = vlog2.f32 %v4430_v21 }
 0x6ed   : > { %v2106_v13 = vpop.xlane.xlu0 %2105 }
 0x6ee   : > { %3372 = vlog2.f32 %v2106_v13  ;;  %v1748_v13 = vadd.f32 %v1688_v14, %v4136_v44 }
 0x6ef   : > { %3374 = vlog2.f32 %v4439_v2 }
 0x6f0   : > { %v3365_v57 = vpop.eup %3364 }
 0x6f1   : > { %v2195_v40 = vmul.f32 0.6931472, %v3365_v57  ;;  %v2112_v49 = vpop.xlane.xlu0 %2111  ;;  %v3367_v3 = vpop.eup %3366 }
 0x6f2   : > { %3376 = vlog2.f32 %v2112_v49  ;;  %v1686_v62 = vmul.f32 0.6931472, %v3367_v3 }
 0x6f3   : > { %v2258_v61 = vadd.f32 %v2195_v40, %v4131_v36  ;;  %3378 = vlog2.f32 %v4446_v17 }
 0x6f4   : > { %v3369_v20 = vpop.eup %3368  ;;  %v1747_v44 = vadd.f32 %v1686_v62, %v4145_v59 }
 0x6f5   : > { %v2290_v21 = vsel %vm1392_vm3, %v1745_v50, %v2258_v61  ;;  %v2201_v11 = vmul.f32 0.6931472, %v3369_v20  ;;  %v2118_v52 = vpop.xlane.xlu0 %2117  ;;  %v3371_v2 = vpop.eup %3370 }
 0x6f6   : > { %v2322_v45 = vsub.f32 %v3903_v54, %v2290_v21  ;;  %3380 = vlog2.f32 %v2118_v52 }
 0x6f7   : > { %v2261_v57 = vadd.f32 %v2201_v11, %v4139_v48  ;;  %3382 = vlog2.f32 %v4453_v31  ;;  %v1690_v48 = vmul.f32 0.6931472, %v3371_v2 }
 0x6f8   : > { %v3373_v51 = vpop.eup %3372  ;;  %2354 = vst.msk [vmem:[%s4571_s24] sm:$0xff] %vm341_vm0, %v2322_v45 }
 0x6f9   : > { %v2293_v36 = vsel %vm1392_vm3, %v1748_v13, %v2261_v57  ;;  %v2199_v17 = vmul.f32 0.6931472, %v3373_v51  ;;  %v2124_v54 = vpop.xlane.xlu0 %2123  ;;  %v3375_v9 = vpop.eup %3374  ;;  %v1749_v61 = vadd.f32 %v1690_v48, %v4154_v18 }
 0x6fa   : > { %v2325_v34 = vsub.f32 %v3910_v58, %v2293_v36  ;;  %3384 = vlog2.f32 %v2124_v54  ;;  %v1694_v59 = vmul.f32 0.6931472, %v3375_v9 }
 0x6fb   : > { %v2260_v40 = vadd.f32 %v2199_v17, %v4149_v6  ;;  %3386 = vlog2.f32 %v4459_v43 }
 0x6fc   : > { %v3377_v49 = vpop.eup %3376  ;;  %2357 = vst.msk [vmem:[%s4571_s24 + $0x18] sm:$0xff] %vm341_vm0, %v2325_v34  ;;  %v1751_v45 = vadd.f32 %v1694_v59, %v4177_v7 }
 0x6fd   : > { %v2292_v31 = vsel %vm1392_vm3, %v1747_v44, %v2260_v40  ;;  %v2203_v3 = vmul.f32 0.6931472, %v3377_v49  ;;  %v2130_v50 = vpop.xlane.xlu0 %2129  ;;  %v3379_v58 = vpop.eup %3378 }
 0x6fe   : > { %v2324_v14 = vsub.f32 %v3919_v0, %v2292_v31  ;;  %3388 = vlog2.f32 %v2130_v50  ;;  %v1698_v18 = vmul.f32 0.6931472, %v3379_v58 }
 0x6ff   : > { %v2262_v20 = vadd.f32 %v2203_v3, %v4158_v23  ;;  %3390 = vlog2.f32 %v4467_v24 }
 0x700   : > { %v3381_v6 = vpop.eup %3380  ;;  %2356 = vst.msk [vmem:[%s4571_s24 + $0x10] sm:$0xff] %vm341_vm0, %v2324_v14  ;;  %v1753_v51 = vadd.f32 %v1698_v18, %v4197_v63  ;;  %v5083_v18 = vld [vmem:[#allocation73_spill] sm:$0xff] }
 0x701   : > { %v2294_v43 = vsel %vm1392_vm3, %v1749_v61, %v2262_v20  ;;  %v2207_v21 = vmul.f32 0.6931472, %v3381_v6  ;;  %v2136_v11 = vpop.xlane.xlu0 %2135  ;;  %v3383_v0 = vpop.eup %3382 }
 0x702   : > { %v2326_v52 = vsub.f32 %v3927_v5, %v2294_v43  ;;  %3392 = vlog2.f32 %v2136_v11  ;;  %v1702_v7 = vmul.f32 0.6931472, %v3383_v0  ;;  %v5080_v43 = vld [vmem:[#allocation20_spill] sm:$0xff]  ;;  %v5081_v11 = vld [vmem:[#allocation41_spill] sm:$0xff]  ;;  %v5082_v0 = vld [vmem:[#allocation42_spill] sm:$0xff] }
 0x703   : > { %v2264_v2 = vadd.f32 %v2207_v21, %v4180_v19  ;;  %3394 = vlog2.f32 %v4477_v53 }
 0x704   : > { %v3385_v23 = vpop.eup %3384  ;;  %2358 = vst.msk [vmem:[%s4571_s24 + $0x20] sm:$0xff] %vm341_vm0, %v2326_v52  ;;  %v1755_v9 = vadd.f32 %v1702_v7, %v4217_v12 }
 0x705   : > { %v2296_v24 = vsel %vm1392_vm3, %v1751_v45, %v2264_v2  ;;  %v2211_v62 = vmul.f32 0.6931472, %v3385_v23  ;;  %v2142_v13 = vpop.xlane.xlu0 %2141  ;;  %v3387_v5 = vpop.eup %3386 }
 0x706   : > { %v2328_v57 = vsub.f32 %v3941_v15, %v2296_v24  ;;  %3396 = vlog2.f32 %v2142_v13  ;;  %v1706_v63 = vmul.f32 0.6931472, %v3387_v5  ;;  %v5084_v24 = vld [vmem:[#allocation8_spill] sm:$0xff]  ;;  %v5085_v5 = vld [vmem:[#allocation45_spill] sm:$0xff] }
 0x707   : > { %v2266_v36 = vadd.f32 %v2211_v62, %v4201_v47  ;;  %3398 = vlog2.f32 %v4486_v28 }
 0x708   : > { %v3389_v19 = vpop.eup %3388  ;;  %2360 = vst.msk [vmem:[%s4571_s24 + $0x30] sm:$0xff] %vm341_vm0, %v2328_v57  ;;  %v1757_v31 = vadd.f32 %v1706_v63, %v4237_v41  ;;  %v5088_v63 = vld [vmem:[#allocation11_spill] sm:$0xff] }
 0x709   : > { %v2298_v53 = vsel %vm1392_vm3, %v1753_v51, %v2266_v36  ;;  %v2215_v17 = vmul.f32 0.6931472, %v3389_v19  ;;  %v2148_v54 = vpop.xlane.xlu0 %2147  ;;  %v3391_v15 = vpop.eup %3390  ;;  %v5086_v36 = vld [vmem:[#allocation46_spill] sm:$0xff] }
 0x70a   : > { %v2330_v34 = vsub.f32 %v3955_v25, %v2298_v53  ;;  %3400 = vlog2.f32 %v2148_v54  ;;  %v1710_v12 = vmul.f32 0.6931472, %v3391_v15 }
 0x70b   : > { %v2268_v44 = vadd.f32 %v2215_v17, %v4221_v33  ;;  %3402 = vlog2.f32 %v4494_v29  ;;  %v5087_v17 = vld [vmem:[#allocation74_spill] sm:$0xff] }
 0x70c   : > { %v3393_v47 = vpop.eup %3392  ;;  %2362 = vst.msk [vmem:[%s4571_s24 + $0x40] sm:$0xff] %vm341_vm0, %v2330_v34  ;;  %v1759_v41 = vadd.f32 %v1710_v12, %v4257_v22 }
 0x70d   : > { %v2300_v28 = vsel %vm1392_vm3, %v1755_v9, %v2268_v44  ;;  %v2219_v48 = vmul.f32 0.6931472, %v3393_v47  ;;  %v2154_v40 = vpop.xlane.xlu0 %2153  ;;  %v3395_v25 = vpop.eup %3394 }
 0x70e   : > { %v2332_v49 = vsub.f32 %v3977_v38, %v2300_v28  ;;  %3404 = vlog2.f32 %v2154_v40 }
 0x70f   : > { %v2270_v3 = vadd.f32 %v2219_v48, %v4241_v10  ;;  %3406 = vlog2.f32 %v4502_v8  ;;  %v1714_v10 = vmul.f32 0.6931472, %v3395_v25  ;;  %v5089_v48 = vld [vmem:[#allocation49_spill] sm:$0xff]  ;;  %v5090_v25 = vld [vmem:[#allocation50_spill] sm:$0xff] }
 0x710   : > { %v3397_v50 = vpop.eup %3396  ;;  %2364 = vst.msk [vmem:[%s4571_s24 + $0x50] sm:$0xff] %vm341_vm0, %v2332_v49 }
 0x711   : > { %v2302_v29 = vsel %vm1392_vm3, %v1757_v31, %v2270_v3  ;;  %v2223_v33 = vmul.f32 0.6931472, %v3397_v50  ;;  %v2160_v14 = vpop.xlane.xlu0 %2159  ;;  %v3399_v61 = vpop.eup %3398  ;;  %v1761_v52 = vadd.f32 %v1714_v10, %v5081_v11  ;;  %v5091_v50 = vld [vmem:[#allocation75_spill] sm:$0xff] }
 0x712   : > { %v2334_v58 = vsub.f32 %v4003_v55, %v2302_v29  ;;  %3408 = vlog2.f32 %v2160_v14 }
 0x713   : > { %v4620_v38 = vpop.xlane.xlu1 %1679  ;;  %3410 = vlog2.f32 %v4443_v1  ;;  %v2272_v59 = vadd.f32 %v2223_v33, %v4261_v39  ;;  %v1718_v39 = vmul.f32 0.6931472, %v3399_v61  ;;  %v5092_v61 = vld [vmem:[#allocation13_spill] sm:$0xff] }
 0x714   : > { %v3401_v20 = vpop.eup %3400  ;;  %3412 = vlog2.f32 %v4461_v42  ;;  %2366 = vst.msk [vmem:[%s4571_s24 + $0x60] sm:$0xff] %vm341_vm0, %v2334_v58 }
 0x715   : > { %3414 = vlog2.f32 %v4509_v26  ;;  %v2304_v55 = vsel %vm1392_vm3, %v1759_v41, %v2272_v59  ;;  %v2227_v8 = vmul.f32 0.6931472, %v3401_v20  ;;  %v2166_v6 = vpop.xlane.xlu0 %2165  ;;  %v3403_v22 = vpop.eup %3402  ;;  %v1763_v51 = vadd.f32 %v1718_v39, %v5085_v5  ;;  %v5096_v39 = vld [vmem:[#allocation27_spill] sm:$0xff] }
 0x716   : > { %v2336_v21 = vsub.f32 %v5080_v43, %v2304_v55  ;;  %3416 = vlog2.f32 %v2166_v6  ;;  %v1722_v7 = vmul.f32 0.6931472, %v3403_v22  ;;  %v5093_v55 = vld [vmem:[#allocation53_spill] sm:$0xff]  ;;  %v5094_v43 = vld [vmem:[#allocation54_spill] sm:$0xff]  ;;  %v5095_v22 = vld [vmem:[#allocation28_spill] sm:$0xff] }
 0x717   : > { %v2103_v1 = vpop.xlane.xlu1 %2102  ;;  %v2274_v45 = vadd.f32 %v2227_v8, %v5082_v0 }
 0x718   : > { %3418 = vlog2.f32 %v2103_v1  ;;  %v3405_v42 = vpop.eup %3404  ;;  %2368 = vst.msk [vmem:[%s4571_s24 + $0x70] sm:$0xff] %vm341_vm0, %v2336_v21  ;;  %v1765_v40 = vadd.f32 %v1722_v7, %v5089_v48  ;;  %v5099_v7 = vld [vmem:[#allocation57_spill] sm:$0xff] }
 0x719   : > { %3420 = vlog2.f32 %v5083_v18  ;;  %v2306_v26 = vsel %vm1392_vm3, %v1761_v52, %v2274_v45  ;;  %v2231_v2 = vmul.f32 0.6931472, %v3405_v42  ;;  %v2172_v23 = vpop.xlane.xlu0 %2171  ;;  %v3407_v57 = vpop.eup %3406  ;;  %v5097_v42 = vld [vmem:[#allocation76_spill] sm:$0xff] }
 0x71a   : > { %3422 = vlog2.f32 %v4518_v32  ;;  %v2338_v62 = vsub.f32 %v5084_v24, %v2306_v26  ;;  %v1726_v49 = vmul.f32 0.6931472, %v3407_v57  ;;  %v5098_v24 = vld [vmem:[#allocation16_spill] sm:$0xff] }
 0x71b   : > { %3424 = vlog2.f32 %v2172_v23  ;;  %v2115_v13 = vpop.xlane.xlu1 %2114  ;;  %v2276_v19 = vadd.f32 %v2231_v2, %v5086_v36 }
 0x71c   : > { %3426 = vlog2.f32 %v2115_v13  ;;  %v3409_v53 = vpop.eup %3408  ;;  %2370 = vst.msk [vmem:[%s4571_s24 + $0x80] sm:$0xff] %vm341_vm0, %v2338_v62  ;;  %v1767_v8 = vadd.f32 %v1726_v49, %v5093_v55 }
 0x71d   : > { %3428 = vlog2.f32 %v5087_v17  ;;  %v3411_v32 = vpop.eup %3410  ;;  %v2308_v54 = vsel %vm1392_vm3, %v1763_v51, %v2276_v19  ;;  %v2235_v34 = vmul.f32 0.6931472, %v3409_v53  ;;  %v2178_v15 = vpop.xlane.xlu0 %2177  ;;  %v5100_v19 = vld [vmem:[#allocation3_spill] sm:$0xff]  ;;  %v5101_v17 = vld [vmem:[#allocation58_spill] sm:$0xff] }
 0x71e   : > { %3430 = vlog2.f32 %v4544_v37  ;;  %v3413_v9 = vpop.eup %3412  ;;  %v2340_v44 = vsub.f32 %v5088_v63, %v2308_v54  ;;  %v1684_v3 = vmul.f32 0.6931472, %v3411_v32  ;;  %v5103_v63 = vld [vmem:[#allocation30_spill] sm:$0xff] }
 0x71f   : > { %3432 = vlog2.f32 %v2178_v15  ;;  %v2121_v47 = vpop.xlane.xlu1 %2120  ;;  %v3415_v28 = vpop.eup %3414  ;;  %v2278_v31 = vadd.f32 %v2235_v34, %v5090_v25  ;;  %v1692_v52 = vmul.f32 0.6931472, %v3413_v9  ;;  %v5102_v34 = vld [vmem:[#allocation29_spill] sm:$0xff]  ;;  %v5105_v25 = vld [vmem:[#allocation18_spill] sm:$0xff] }
 0x720   : > { %3434 = vlog2.f32 %v2121_v47  ;;  %v3417_v12 = vpop.eup %3416  ;;  %2372 = vst.msk [vmem:[%s4571_s24 + $0x90] sm:$0xff] %vm341_vm0, %v2340_v44  ;;  %v1730_v6 = vmul.f32 0.6931472, %v3415_v28  ;;  %v1746_v11 = vadd.f32 %v1684_v3, %v5095_v22 }
 0x721   : > { %3436 = vlog2.f32 %v5091_v50  ;;  %v2310_v29 = vsel %vm1392_vm3, %v1765_v40, %v2278_v31  ;;  %v2239_v33 = vmul.f32 0.6931472, %v3417_v12  ;;  %v2184_v14 = vpop.xlane.xlu0 %2183  ;;  %v1750_v15 = vadd.f32 %v1692_v52, %v5102_v34  ;;  %v5104_v40 = vld [vmem:[#allocation61_spill] sm:$0xff]  ;;  %v5118_v34 = vld [vmem:[#allocation6_spill] sm:$0xff] }
 0x722   : > { %v3419_v37 = vpop.eup %3418  ;;  %v2342_v41 = vsub.f32 %v5092_v61, %v2310_v29  ;;  %3438 = vlog2.f32 %v2184_v14  ;;  %v1769_v36 = vadd.f32 %v1730_v6, %v5099_v7 }
 0x723   : > { %v3421_v58 = vpop.eup %3420  ;;  %v2197_v10 = vmul.f32 0.6931472, %v3419_v37  ;;  %v2127_v59 = vpop.xlane.xlu1 %2126  ;;  %v2280_v21 = vadd.f32 %v2239_v33, %v5094_v43  ;;  %v5106_v33 = vld [vmem:[#allocation4_spill] sm:$0xff] }
 0x724   : > { %v3423_v20 = vpop.eup %3422  ;;  %3440 = vlog2.f32 %v2127_v59  ;;  %2374 = vst.msk [vmem:[%s4571_s24 + $0xa0] sm:$0xff] %vm341_vm0, %v2342_v41  ;;  %v1696_v9 = vmul.f32 0.6931472, %v3421_v58  ;;  %v5108_v41 = vld [vmem:[#allocation31_spill] sm:$0xff] }
 0x725   : > { %v3425_v1 = vpop.eup %3424  ;;  %v2259_v0 = vadd.f32 %v2197_v10, %v5096_v39  ;;  %3442 = vlog2.f32 %v5097_v42  ;;  %v2312_v18 = vsel %vm1392_vm3, %v1767_v8, %v2280_v21  ;;  %v1734_v23 = vmul.f32 0.6931472, %v3423_v20  ;;  %v5109_v20 = vld [vmem:[#allocation32_spill] sm:$0xff]  ;;  %v5110_v21 = vld [vmem:[#allocation77_spill] sm:$0xff] }
 0x726   : > { %v3427_v45 = vpop.eup %3426  ;;  %v2243_v26 = vmul.f32 0.6931472, %v3425_v1  ;;  %v2344_v62 = vsub.f32 %v5098_v24, %v2312_v18  ;;  %v1752_v10 = vadd.f32 %v1696_v9, %v5108_v41  ;;  %v5111_v1 = vld [vmem:[#allocation22_spill] sm:$0xff]  ;;  %v5113_v18 = vld [vmem:[#allocation5_spill] sm:$0xff]  ;;  %v5119_v9 = vld [vmem:[#allocation35_spill] sm:$0xff] }
 0x727   : > { %v3429_v2 = vpop.eup %3428  ;;  %v2291_v13 = vsel %vm1392_vm3, %v1746_v11, %v2259_v0  ;;  %v2205_v57 = vmul.f32 0.6931472, %v3427_v45  ;;  %v2133_v5 = vpop.xlane.xlu1 %2132  ;;  %v1771_v49 = vadd.f32 %v1734_v23, %v5104_v40  ;;  %v5112_v45 = vld [vmem:[#allocation65_spill] sm:$0xff] }
 0x728   : > { %v3431_v51 = vpop.eup %3430  ;;  %v2323_v53 = vsub.f32 %v5100_v19, %v2291_v13  ;;  %v2282_v32 = vadd.f32 %v2243_v26, %v5101_v17  ;;  %3444 = vlog2.f32 %v2133_v5  ;;  %2376 = vst.msk [vmem:[%s4571_s24 + $0xb0] sm:$0xff] %vm341_vm0, %v2344_v62  ;;  %v1700_v59 = vmul.f32 0.6931472, %v3429_v2  ;;  %v5114_v2 = vld [vmem:[#allocation66_spill] sm:$0xff]  ;;  %v5115_v24 = vld [vmem:[#allocation33_spill] sm:$0xff] }
 0x729   : > { %v3433_v54 = vpop.eup %3432  ;;  %v2263_v44 = vadd.f32 %v2205_v57, %v5103_v63  ;;  %3446 = vlog2.f32 %v4505_v46  ;;  %v1738_v29 = vmul.f32 0.6931472, %v3431_v51  ;;  %v5107_v46 = vld [vmem:[#allocation62_spill] sm:$0xff] }
 0x72a   : > { %v3435_v47 = vpop.eup %3434  ;;  %2355 = vst.msk [vmem:[%s4571_s24 + $0x8] sm:$0xff] %vm341_vm0, %v2323_v53  ;;  %v2314_v28 = vsel %vm1392_vm3, %v1769_v36, %v2282_v32  ;;  %v2247_v48 = vmul.f32 0.6931472, %v3433_v54  ;;  %v1754_v62 = vadd.f32 %v1700_v59, %v5115_v24  ;;  %v5116_v57 = vld [vmem:[#allocation34_spill] sm:$0xff]  ;;  %v5117_v36 = vld [vmem:[#allocation24_spill] sm:$0xff]  ;;  %v5125_v59 = vld [vmem:[#allocation39_spill] sm:$0xff] }
 0x72b   : > { %v2346_v31 = vsub.f32 %v5105_v25, %v2314_v28  ;;  %v2295_v12 = vsel %vm1392_vm3, %v1750_v15, %v2263_v44  ;;  %v2209_v3 = vmul.f32 0.6931472, %v3435_v47  ;;  %v2139_v37 = vpop.xlane.xlu1 %2138  ;;  %v3437_v50 = vpop.eup %3436  ;;  %v1773_v42 = vadd.f32 %v1738_v29, %v5112_v45  ;;  %v5120_v47 = vld [vmem:[#allocation36_spill] sm:$0xff]  ;;  %v5121_v25 = vld [vmem:[#allocation9_spill] sm:$0xff]  ;;  %v5123_v29 = vld [vmem:[#allocation38_spill] sm:$0xff] }
 0x72c   : > { %v2327_v14 = vsub.f32 %v5106_v33, %v2295_v12  ;;  %v2284_v58 = vadd.f32 %v2247_v48, %v5107_v46  ;;  %3448 = vlog2.f32 %v2139_v37  ;;  %v3439_v61 = vpop.eup %3438  ;;  %v1704_v13 = vmul.f32 0.6931472, %v3437_v50  ;;  %v5130_v24 = vld [vmem:[#allocation7_spill] sm:$0xff] }
 0x72d   : > { %2378 = vst.msk [vmem:[%s4571_s24 + $0xc0] sm:$0xff] %vm341_vm0, %v2346_v31  ;;  %v2265_v55 = vadd.f32 %v2209_v3, %v5109_v20  ;;  %v2251_v43 = vmul.f32 0.6931472, %v3439_v61  ;;  %3450 = vlog2.f32 %v5110_v21  ;;  %v5122_v3 = vld [vmem:[#allocation37_spill] sm:$0xff]  ;;  %v5124_v61 = vld [vmem:[#allocation14_spill] sm:$0xff] }
 0x72e   : > { %v3441_v8 = vpop.eup %3440  ;;  %2359 = vst.msk [vmem:[%s4571_s24 + $0x28] sm:$0xff] %vm341_vm0, %v2327_v14  ;;  %v2316_v6 = vsel %vm1392_vm3, %v1771_v49, %v2284_v58  ;;  %v1756_v63 = vadd.f32 %v1704_v13, %v5119_v9  ;;  %v5134_v9 = vld [vmem:[#allocation51_spill] sm:$0xff] }
 0x72f   : > { %v2348_v22 = vsub.f32 %v5111_v1, %v2316_v6  ;;  %v2297_v11 = vsel %vm1392_vm3, %v1752_v10, %v2265_v55  ;;  %v2213_v52 = vmul.f32 0.6931472, %v3441_v8  ;;  %v2145_v39 = vpop.xlane.xlu1 %2144  ;;  %v3443_v0 = vpop.eup %3442  ;;  %v2286_v23 = vadd.f32 %v2251_v43, %v5114_v2  ;;  %v5126_v8 = vld [vmem:[#allocation40_spill] sm:$0xff] }
 0x730   : > { %v2329_v26 = vsub.f32 %v5113_v18, %v2297_v11  ;;  %3452 = vlog2.f32 %v2145_v39  ;;  %v1708_v44 = vmul.f32 0.6931472, %v3443_v0  ;;  %v5128_v0 = vld [vmem:[#allocation43_spill] sm:$0xff] }
 0x731   : > { %2380 = vst.msk [vmem:[%s4571_s24 + $0xd0] sm:$0xff] %vm341_vm0, %v2348_v22  ;;  %v2267_v5 = vadd.f32 %v2213_v52, %v5116_v57  ;;  %v2318_v7 = vsel %vm1392_vm3, %v1773_v42, %v2286_v23  ;;  %3454 = vlog2.f32 %v4520_v35  ;;  %v5127_v22 = vld [vmem:[#allocation19_spill] sm:$0xff]  ;;  %v5129_v42 = vld [vmem:[#allocation44_spill] sm:$0xff] }
 0x732   : > { %v3445_v51 = vpop.eup %3444  ;;  %2361 = vst.msk [vmem:[%s4571_s24 + $0x38] sm:$0xff] %vm341_vm0, %v2329_v26  ;;  %v2350_v19 = vsub.f32 %v5117_v36, %v2318_v7  ;;  %v1758_v37 = vadd.f32 %v1708_v44, %v5122_v3  ;;  %v5131_v57 = vld [vmem:[#allocation47_spill] sm:$0xff]  ;;  %v5132_v7 = vld [vmem:[#allocation48_spill] sm:$0xff] }
 0x733   : > { %v2299_v53 = vsel %vm1392_vm3, %v1754_v62, %v2267_v5  ;;  %v2217_v17 = vmul.f32 0.6931472, %v3445_v51  ;;  %v2151_v32 = vpop.xlane.xlu1 %2150  ;;  %v3447_v54 = vpop.eup %3446 }
 0x734   : > { %v2331_v15 = vsub.f32 %v5118_v34, %v2299_v53  ;;  %3456 = vlog2.f32 %v2151_v32  ;;  %2382 = vst.msk [vmem:[%s4571_s24 + $0xe0] sm:$0xff] %vm341_vm0, %v2350_v19  ;;  %v1712_v50 = vmul.f32 0.6931472, %v3447_v54  ;;  %v5133_v54 = vld [vmem:[#allocation10_spill] sm:$0xff] }
 0x735   : > { %v2269_v28 = vadd.f32 %v2217_v17, %v5120_v47  ;;  %3458 = vlog2.f32 %v4531_v27  ;;  %v5135_v47 = vld [vmem:[#allocation52_spill] sm:$0xff] }
 0x736   : > { %v3449_v48 = vpop.eup %3448  ;;  %2363 = vst.msk [vmem:[%s4571_s24 + $0x48] sm:$0xff] %vm341_vm0, %v2331_v15  ;;  %v1760_v20 = vadd.f32 %v1712_v50, %v5125_v59  ;;  %v5137_v50 = vld [vmem:[#allocation55_spill] sm:$0xff] }
 0x737   : > { %v2301_v35 = vsel %vm1392_vm3, %v1756_v63, %v2269_v28  ;;  %v2221_v40 = vmul.f32 0.6931472, %v3449_v48  ;;  %v2157_v49 = vpop.xlane.xlu1 %2156  ;;  %v3451_v12 = vpop.eup %3450 }
 0x738   : > { %v2333_v31 = vsub.f32 %v5121_v25, %v2301_v35  ;;  %3460 = vlog2.f32 %v2157_v49  ;;  %v1716_v55 = vmul.f32 0.6931472, %v3451_v12 }
 0x739   : > { %v2271_v33 = vadd.f32 %v2221_v40, %v5123_v29  ;;  %3462 = vlog2.f32 %v4536_v60 }
 0x73a   : > { %v3453_v14 = vpop.eup %3452  ;;  %2365 = vst.msk [vmem:[%s4571_s24 + $0x58] sm:$0xff] %vm341_vm0, %v2333_v31  ;;  %v1762_v45 = vadd.f32 %v1716_v55, %v5128_v0  ;;  %v5136_v31 = vld [vmem:[#allocation12_spill] sm:$0xff]  ;;  %v5141_v55 = vld [vmem:[#allocation15_spill] sm:$0xff] }
 0x73b   : > { %v2303_v27 = vsel %vm1392_vm3, %v1758_v37, %v2271_v33  ;;  %v2225_v46 = vmul.f32 0.6931472, %v3453_v14  ;;  %v2163_v58 = vpop.xlane.xlu1 %2162  ;;  %v3455_v10 = vpop.eup %3454  ;;  %v5138_v14 = vld [vmem:[#allocation56_spill] sm:$0xff] }
 0x73c   : > { %v2335_v41 = vsub.f32 %v5124_v61, %v2303_v27  ;;  %3464 = vlog2.f32 %v2163_v58  ;;  %v5139_v58 = vld [vmem:[#allocation67_spill] sm:$0xff] }
 0x73d   : > { %3466 = vlog2.f32 %v4555_v4  ;;  %v2273_v6 = vadd.f32 %v2225_v46, %v5126_v8  ;;  %v1720_v4 = vmul.f32 0.6931472, %v3455_v10 }
 0x73e   : > { %v3457_v43 = vpop.eup %3456  ;;  %2367 = vst.msk [vmem:[%s4571_s24 + $0x68] sm:$0xff] %vm341_vm0, %v2335_v41  ;;  %3468 = vlog2.f32 %v4541_v56  ;;  %v5140_v41 = vld [vmem:[#allocation68_spill] sm:$0xff] }
 0x73f   : > { %v2305_v60 = vsel %vm1392_vm3, %v1760_v20, %v2273_v6  ;;  %v2229_v21 = vmul.f32 0.6931472, %v3457_v43  ;;  %v2169_v1 = vpop.xlane.xlu1 %2168  ;;  %v2190_v52 = vpop.xlane.xlu0 %2189  ;;  %v1764_v5 = vadd.f32 %v1720_v4, %v5131_v57 }
 0x740   : > { %v2337_v11 = vsub.f32 %v5127_v22, %v2305_v60  ;;  %3470 = vlog2.f32 %v2169_v1  ;;  %v3459_v39 = vpop.eup %3458  ;;  %v5142_v60 = vld [vmem:[#allocation59_spill] sm:$0xff]  ;;  %v5143_v22 = vld [vmem:[#allocation26_spill] sm:$0xff] }
 0x741   : > { %v2275_v18 = vadd.f32 %v2229_v21, %v5129_v42  ;;  %3472 = vlog2.f32 %v2190_v52  ;;  %v1724_v51 = vmul.f32 0.6931472, %v3459_v39  ;;  %v5144_v52 = vld [vmem:[#allocation60_spill] sm:$0xff]  ;;  %v5145_v42 = vld [vmem:[#allocation17_spill] sm:$0xff] }
 0x742   : > { %v3461_v26 = vpop.eup %3460  ;;  %2369 = vst.msk [vmem:[%s4571_s24 + $0x78] sm:$0xff] %vm341_vm0, %v2337_v11  ;;  %3474 = vlog2.f32 %v4548_v16 }
 0x743   : > { %v2307_v56 = vsel %vm1392_vm3, %v1762_v45, %v2275_v18  ;;  %v2233_v2 = vmul.f32 0.6931472, %v3461_v26  ;;  %v2175_v23 = vpop.xlane.xlu1 %2174  ;;  %v3463_v13 = vpop.eup %3462  ;;  %v1766_v63 = vadd.f32 %v1724_v51, %v5134_v9  ;;  %v5146_v26 = vld [vmem:[#allocation63_spill] sm:$0xff] }
 0x744   : > { %v2339_v62 = vsub.f32 %v5130_v24, %v2307_v56  ;;  %3476 = vlog2.f32 %v2175_v23  ;;  %v1728_v44 = vmul.f32 0.6931472, %v3463_v13  ;;  %v5147_v23 = vld [vmem:[#allocation64_spill] sm:$0xff] }
 0x745   : > { %v2277_v36 = vadd.f32 %v2233_v2, %v5132_v7  ;;  %3478 = vlog2.f32 %v4553_v30  ;;  %v5149_v7 = vld [vmem:[#allocation69_spill] sm:$0xff] }
 0x746   : > { %v3465_v19 = vpop.eup %3464  ;;  %2371 = vst.msk [vmem:[%s4571_s24 + $0x88] sm:$0xff] %vm341_vm0, %v2339_v62  ;;  %v1768_v29 = vadd.f32 %v1728_v44, %v5137_v50  ;;  %v5152_v44 = vld [vmem:[#allocation71_spill] sm:$0xff] }
 0x747   : > { %v3467_v53 = vpop.eup %3466  ;;  %v2309_v16 = vsel %vm1392_vm3, %v1764_v5, %v2277_v36  ;;  %v2237_v17 = vmul.f32 0.6931472, %v3465_v19  ;;  %v2181_v32 = vpop.xlane.xlu1 %2180  ;;  %v5148_v5 = vld [vmem:[#allocation21_spill] sm:$0xff]  ;;  %v5150_v19 = vld [vmem:[#allocation70_spill] sm:$0xff] }
 0x748   : > { %v2341_v34 = vsub.f32 %v5133_v54, %v2309_v16  ;;  %3480 = vlog2.f32 %v2181_v32  ;;  %v3469_v15 = vpop.eup %3468  ;;  %v1742_v35 = vmul.f32 0.6931472, %v3467_v53 }
 0x749   : > { %v2279_v28 = vadd.f32 %v2237_v17, %v5135_v47  ;;  %v1732_v33 = vmul.f32 0.6931472, %v3469_v15  ;;  %v5151_v17 = vld [vmem:[#allocation23_spill] sm:$0xff] }
 0x74a   : > { %v3471_v48 = vpop.eup %3470  ;;  %2373 = vst.msk [vmem:[%s4571_s24 + $0x98] sm:$0xff] %vm341_vm0, %v2341_v34  ;;  %v1775_v61 = vadd.f32 %v1742_v35, %v5139_v58 }
 0x74b   : > { %v3473_v40 = vpop.eup %3472  ;;  %v2311_v30 = vsel %vm1392_vm3, %v1766_v63, %v2279_v28  ;;  %v2241_v49 = vmul.f32 0.6931472, %v3471_v48  ;;  %v2187_v25 = vpop.xlane.xlu1 %2186  ;;  %v1770_v21 = vadd.f32 %v1732_v33, %v5142_v60  ;;  %v5153_v28 = vld [vmem:[#allocation72_spill] sm:$0xff] }
 0x74c   : > { %v2343_v12 = vsub.f32 %v5136_v31, %v2311_v30  ;;  %v2255_v3 = vmul.f32 0.6931472, %v3473_v40  ;;  %3482 = vlog2.f32 %v2187_v25  ;;  %v3475_v37 = vpop.eup %3474  ;;  %v5154_v40 = vld [vmem:[#allocation25_spill] sm:$0xff] }
 0x74d   : > { %v2281_v27 = vadd.f32 %v2241_v49, %v5138_v14  ;;  %v1736_v1 = vmul.f32 0.6931472, %v3475_v37  ;;  %3484 = vlog2.f32 %v4620_v38 }
 0x74e   : > { %v3477_v46 = vpop.eup %3476  ;;  %2375 = vst.msk [vmem:[%s4571_s24 + $0xa8] sm:$0xff] %vm341_vm0, %v2343_v12  ;;  %v2288_v10 = vadd.f32 %v2255_v3, %v5140_v41 }
 0x74f   : > { %v2313_v59 = vsel %vm1392_vm3, %v1768_v29, %v2281_v27  ;;  %v2245_v20 = vmul.f32 0.6931472, %v3477_v46  ;;  %v3479_v43 = vpop.eup %3478  ;;  %v1772_v56 = vadd.f32 %v1736_v1, %v5146_v26 }
 0x750   : > { %v2345_v8 = vsub.f32 %v5141_v55, %v2313_v59  ;;  %v2320_v6 = vsel %vm1392_vm3, %v1775_v61, %v2288_v10  ;;  %v1740_v2 = vmul.f32 0.6931472, %v3479_v43 }
 0x751   : > { %v2352_v11 = vsub.f32 %v5143_v22, %v2320_v6  ;;  %v2283_v39 = vadd.f32 %v2245_v20, %v5144_v52 }
 0x752   : > { %v3481_v0 = vpop.eup %3480  ;;  %2377 = vst.msk [vmem:[%s4571_s24 + $0xb8] sm:$0xff] %vm341_vm0, %v2345_v8  ;;  %v1774_v36 = vadd.f32 %v1740_v2, %v5149_v7 }
 0x753   : > { %2384 = vst.msk [vmem:[%s4571_s24 + $0xf0] sm:$0xff] %vm341_vm0, %v2352_v11  ;;  %v2315_v45 = vsel %vm1392_vm3, %v1770_v21, %v2283_v39  ;;  %v2249_v4 = vmul.f32 0.6931472, %v3481_v0 }
 0x754   : > { %v2347_v18 = vsub.f32 %v5145_v42, %v2315_v45 }
 0x755   : > { %v2285_v24 = vadd.f32 %v2249_v4, %v5147_v23 }
 0x756   : > { %v3483_v62 = vpop.eup %3482  ;;  %2379 = vst.msk [vmem:[%s4571_s24 + $0xc8] sm:$0xff] %vm341_vm0, %v2347_v18 }
 0x757   : > { %v2317_v13 = vsel %vm1392_vm3, %v1772_v56, %v2285_v24  ;;  %v2253_v57 = vmul.f32 0.6931472, %v3483_v62  ;;  %v3485_v34 = vpop.eup %3484 }
 0x758   : > { %v2349_v51 = vsub.f32 %v5148_v5, %v2317_v13  ;;  %v1744_v15 = vmul.f32 0.6931472, %v3485_v34 }
 0x759   : > { %v2287_v53 = vadd.f32 %v2253_v57, %v5150_v19 }
 0x75a   : > { %2381 = vst.msk [vmem:[%s4571_s24 + $0xd8] sm:$0xff] %vm341_vm0, %v2349_v51  ;;  %v1776_v47 = vadd.f32 %v1744_v15, %v5152_v44 }
 0x75b   : > { %v2319_v16 = vsel %vm1392_vm3, %v1774_v36, %v2287_v53 }
 0x75c   : > { %v2351_v32 = vsub.f32 %v5151_v17, %v2319_v16 }
 0x75e   : > { %2383 = vst.msk [vmem:[%s4571_s24 + $0xe8] sm:$0xff] %vm341_vm0, %v2351_v32 }
 0x771   : > { %v2193_v54 = vpop.xlane.xlu1 %2192 }
 0x772   : > { %3486 = vlog2.f32 %v2193_v54 }
 0x77c   : > { %v3487_v9 = vpop.eup %3486 }
 0x77d   : > { %v2257_v63 = vmul.f32 0.6931472, %v3487_v9 }
 0x77e   : > { %2392 = sbr.rel (!%p3642_p4) target bundleno = 1981 (0x7bd), region = 52 }
 0x77f   : > { %v2289_v48 = vadd.f32 %v2257_v63, %v5153_v28 }
 0x781   : > { %v2321_v35 = vsel %vm1392_vm3, %v1776_v47, %v2289_v48 }
 0x782   : > { %v2353_v30 = vsub.f32 %v5154_v40, %v2321_v35 }
 0x784   : > { %2385 = vst.msk [vmem:[%s4571_s24 + $0xf8] sm:$0xff] %vm341_vm0, %v2353_v30 }
 0x785   : > { %s5164_s12 = smov (!%p2395_p8, %s2394_s12), 32 }
 0x786   : > { %s2833_s18 = sshll.u32 %s5164_s12, 7 }
 0x787   : > { %p2836_p9 = scmp.eq.s32.totalorder %s2833_s18, 0 }
 0x788   : > { %s4800_s19 = sshrl.u32 (!%p2836_p9), %s5164_s12, 5 }
 0x789   : > { %2403 = sbr.rel (%p2836_p9) target bundleno = 1981 (0x7bd), region = 56  ;;  %p2837_p10 = scmp.le.s32.totalorder (!%p2836_p9), %s4800_s19, 0 }
 0x790   : > { %2681 = sbr.rel (%p2837_p10) target bundleno = 1960 (0x7a8), region = 132  ;;  %s5155_s27 = smov (!%p2837_p10), %s4794_s17 }
 0x791   : > { %s5156_s9 = smov (!%p2837_p10), %s4571_s24  ;;  %s4809_s14 = smov (!%p2837_p10), 0  }
 0x792   : > { %s4811_s20 = smov (!%p2837_p10), 0  }
 0x797 LB: >> { %v2527_v38 = vld [vmem:[%s3550_s9] sm:$0xff]  ;;  %v2529_v49 = vld [vmem:[%s3550_s9 + $0x8] sm:$0xff]  ;;  %v2531_v25 = vld [vmem:[%s3550_s9 + $0x10] sm:$0xff]  ;;  %s2591_s21 = sadd.s32 1, %s3554_s14  ;;  %s2521_s20 = sadd.s32 1, %s3558_s20   ;;  %s3558_s20 = sphi %s4811_s20, %s2521_s20   ;;  %s3554_s14 = sphi %s4809_s14, %s5159_s14   ;;  %s3550_s9 = sphi %s5156_s9, %s5158_s9   ;;  %s3546_s27 = sphi %s5155_s27, %s5157_s27  }
 0x798   : >> { %2528 = vst [vmem:[%s3546_s27] sm:$0xff] %v2527_v38  ;;  %2530 = vst [vmem:[%s3546_s27 + $0x8] sm:$0xff] %v2529_v49  ;;  %v2533_v31 = vld [vmem:[%s3550_s9 + $0x18] sm:$0xff]  ;;  %v2535_v12 = vld [vmem:[%s3550_s9 + $0x20] sm:$0xff]  ;;  %p2592_p11 = scmp.ge.s32.totalorder %s2591_s21, %s4800_s19  ;;  %p2520_p12 = scmp.ge.s32.totalorder %s2521_s20, %s4800_s19 }
 0x799   : >> { %2532 = vst [vmem:[%s3546_s27 + $0x10] sm:$0xff] %v2531_v25  ;;  %v2537_v3 = vld [vmem:[%s3550_s9 + $0x28] sm:$0xff]  ;;  %2534 = vst [vmem:[%s3546_s27 + $0x18] sm:$0xff] %v2533_v31  ;;  %v2539_v37 = vld [vmem:[%s3550_s9 + $0x30] sm:$0xff] }
 0x79a   : >> { %2536 = vst [vmem:[%s3546_s27 + $0x20] sm:$0xff] %v2535_v12  ;;  %2538 = vst [vmem:[%s3546_s27 + $0x28] sm:$0xff] %v2537_v3  ;;  %v2541_v50 = vld [vmem:[%s3550_s9 + $0x38] sm:$0xff]  ;;  %v2543_v29 = vld [vmem:[%s3550_s9 + $0x40] sm:$0xff]  ;;  %s5166_s21 = smov (%p2592_p11, %s2591_s21), 0 }
 0x79b   : >> { %2540 = vst [vmem:[%s3546_s27 + $0x30] sm:$0xff] %v2539_v37  ;;  %2542 = vst [vmem:[%s3546_s27 + $0x38] sm:$0xff] %v2541_v50  ;;  %v2545_v33 = vld [vmem:[%s3550_s9 + $0x48] sm:$0xff]  ;;  %v2547_v14 = vld [vmem:[%s3550_s9 + $0x50] sm:$0xff]  ;;  %s2838_s22 = sshll.u32 %s5166_s21, 8  ;;  %s5159_s14 = smov %s5166_s21 }
 0x79c   : >> { %2544 = vst [vmem:[%s3546_s27 + $0x40] sm:$0xff] %v2543_v29  ;;  %v2549_v27 = vld [vmem:[%s3550_s9 + $0x58] sm:$0xff]  ;;  %2546 = vst [vmem:[%s3546_s27 + $0x48] sm:$0xff] %v2545_v33  ;;  %v2551_v46 = vld [vmem:[%s3550_s9 + $0x60] sm:$0xff]  ;;  %s4867_s23 = scalar_lea.vmem %s4571_s24, %s2838_s22 [#allocation2]   ;;  %s2597_s26 = scalar_lea.vmem %s4794_s17, %s2838_s22  }
 0x79d   : >> { %2548 = vst [vmem:[%s3546_s27 + $0x50] sm:$0xff] %v2547_v14  ;;  %2550 = vst [vmem:[%s3546_s27 + $0x58] sm:$0xff] %v2549_v27  ;;  %v2553_v58 = vld [vmem:[%s3550_s9 + $0x68] sm:$0xff]  ;;  %v2555_v61 = vld [vmem:[%s3550_s9 + $0x70] sm:$0xff] }
 0x79e   : >> { %2552 = vst [vmem:[%s3546_s27 + $0x60] sm:$0xff] %v2551_v46  ;;  %2554 = vst [vmem:[%s3546_s27 + $0x68] sm:$0xff] %v2553_v58  ;;  %v2557_v41 = vld [vmem:[%s3550_s9 + $0x78] sm:$0xff]  ;;  %v2559_v10 = vld [vmem:[%s3550_s9 + $0x80] sm:$0xff] }
 0x79f   : >> { %2556 = vst [vmem:[%s3546_s27 + $0x70] sm:$0xff] %v2555_v61  ;;  %v2561_v59 = vld [vmem:[%s3550_s9 + $0x88] sm:$0xff]  ;;  %2558 = vst [vmem:[%s3546_s27 + $0x78] sm:$0xff] %v2557_v41  ;;  %v2563_v20 = vld [vmem:[%s3550_s9 + $0x90] sm:$0xff] }
 0x7a0   : >> { %2560 = vst [vmem:[%s3546_s27 + $0x80] sm:$0xff] %v2559_v10  ;;  %2562 = vst [vmem:[%s3546_s27 + $0x88] sm:$0xff] %v2561_v59  ;;  %v2565_v55 = vld [vmem:[%s3550_s9 + $0x98] sm:$0xff]  ;;  %v2567_v8 = vld [vmem:[%s3550_s9 + $0xa0] sm:$0xff] }
 0x7a1   : >> { %2564 = vst [vmem:[%s3546_s27 + $0x90] sm:$0xff] %v2563_v20  ;;  %2566 = vst [vmem:[%s3546_s27 + $0x98] sm:$0xff] %v2565_v55  ;;  %v2569_v6 = vld [vmem:[%s3550_s9 + $0xa8] sm:$0xff]  ;;  %v2571_v43 = vld [vmem:[%s3550_s9 + $0xb0] sm:$0xff]  ;;  %2523 = sbr.rel (!%p2520_p12) target bundleno = 1943 (0x797), region = 138 }
 0x7a2   : >> { %2568 = vst [vmem:[%s3546_s27 + $0xa0] sm:$0xff] %v2567_v8  ;;  %v2573_v60 = vld [vmem:[%s3550_s9 + $0xb8] sm:$0xff]  ;;  %2570 = vst [vmem:[%s3546_s27 + $0xa8] sm:$0xff] %v2569_v6  ;;  %v2575_v21 = vld [vmem:[%s3550_s9 + $0xc0] sm:$0xff] }
 0x7a3   : >> { %2572 = vst [vmem:[%s3546_s27 + $0xb0] sm:$0xff] %v2571_v43  ;;  %2574 = vst [vmem:[%s3546_s27 + $0xb8] sm:$0xff] %v2573_v60  ;;  %v2577_v1 = vld [vmem:[%s3550_s9 + $0xc8] sm:$0xff]  ;;  %v2579_v22 = vld [vmem:[%s3550_s9 + $0xd0] sm:$0xff] }
 0x7a4   : >> { %2576 = vst [vmem:[%s3546_s27 + $0xc0] sm:$0xff] %v2575_v21  ;;  %2578 = vst [vmem:[%s3546_s27 + $0xc8] sm:$0xff] %v2577_v1  ;;  %v2581_v11 = vld [vmem:[%s3550_s9 + $0xd8] sm:$0xff]  ;;  %v2583_v52 = vld [vmem:[%s3550_s9 + $0xe0] sm:$0xff] }
 0x7a5   : >> { %2580 = vst [vmem:[%s3546_s27 + $0xd0] sm:$0xff] %v2579_v22  ;;  %v2585_v39 = vld [vmem:[%s3550_s9 + $0xe8] sm:$0xff]  ;;  %2582 = vst [vmem:[%s3546_s27 + $0xd8] sm:$0xff] %v2581_v11  ;;  %v2587_v0 = vld [vmem:[%s3550_s9 + $0xf0] sm:$0xff] }
 0x7a6   : >> { %2584 = vst [vmem:[%s3546_s27 + $0xe0] sm:$0xff] %v2583_v52  ;;  %2586 = vst [vmem:[%s3546_s27 + $0xe8] sm:$0xff] %v2585_v39  ;;  %v2589_v45 = vld [vmem:[%s3550_s9 + $0xf8] sm:$0xff]  ;;  %s5158_s9 = smov %s4867_s23 }
 0x7a7   : >> { %2588 = vst [vmem:[%s3546_s27 + $0xf0] sm:$0xff] %v2587_v0  ;;  %2590 = vst [vmem:[%s3546_s27 + $0xf8] sm:$0xff] %v2589_v45  ;;  %s5157_s27 = smov %s2597_s26 }
 0x7a8 PF: > { %s4908_s29 = sand.u32 31, %s5164_s12   ;;  %s2849_s30 = sshll.u32 %s4800_s19, 8 }
 0x7a9   : > { %s2602_s10 = scalar_lea.vmem %s4571_s24, %s2849_s30 [#allocation2]   ;;  %s2604_s11 = scalar_lea.vmem %s4794_s17, %s2849_s30  }
 0x7aa   : > { %p2843_p13 = scmp.le.s32.totalorder %s4908_s29, 0 }
 0x7ab   : > { %s3560_s13 = smov (!%p2843_p13), %s2604_s11   ;;  %s3564_s15 = smov (!%p2843_p13), %s2602_s10  }
 0x7ac   : > { %2695 = sbr.rel (%p2843_p13) target bundleno = 1981 (0x7bd), region = 143  ;;  %s3568_s16 = smov (!%p2843_p13), 0  }
 0x7ad   : > { %s3572_s18 = smov (!%p2843_p13), 0  }
 0x7b3 LB: >> { %v2614_v4 = vld [vmem:[%s3566_s15] sm:$0xff]  ;;  %s2616_s12 = sadd.s32 1, %s3570_s16  ;;  %s2608_s18 = sadd.s32 1, %s3574_s18   ;;  %s3574_s18 = sphi %s3572_s18, %s2608_s18   ;;  %s3570_s16 = sphi %s3568_s16, %s3569_s16   ;;  %s3566_s15 = sphi %s3564_s15, %s2621_s15   ;;  %s3562_s13 = sphi %s3560_s13, %s2622_s13  }
 0x7b4   : >> { %2615 = vst [vmem:[%s3562_s13] sm:$0xff] %v2614_v4  ;;  %p2617_p0 = scmp.ge.s32.totalorder %s2616_s12, %s4908_s29  ;;  %p2607_p1 = scmp.ge.s32.totalorder %s2608_s18, %s4908_s29 }
 0x7b6   : >> { %s5168_s12 = smov (%p2617_p0, %s2616_s12), 0  ;;  %2610 = sbr.rel (!%p2607_p1) target bundleno = 1971 (0x7b3), region = 149 }
 0x7b7   : >> { %s2844_s24 = sshll.u32 %s5168_s12, 3  ;;  %s3569_s16 = smov %s5168_s12  }
 0x7b8   : >> { %s2621_s15 = scalar_lea.vmem %s2602_s10, %s2844_s24 [#allocation2]   ;;  %s2622_s13 = scalar_lea.vmem %s2604_s11, %s2844_s24  }
 0x7bd PF: > { %p14_p2 = scmp.ge.s32.totalorder %s3632_s28, 4   ;;  %s5160_s24 = smov %s3538_s25 }
 0x7be   : > { %s5161_s25 = smov %s3640_s8  ;;  %s5162_s26 = smov %s3632_s28 }
 0x7bf   :  { %16 = sbr.rel (!%p14_p2) target bundleno = 2 (0x2), region = 160 }

</bundles_post_ra>
